<compile_context>
chip_gen: v7x
topology: tpu7x:2x2x1
jax: 0.10.0
libtpu: 0.0.40
codegen_flags: <defaults>
</compile_context>

<pallas_src>
import math

import jax
import jax.numpy as jnp
from jax.experimental import pallas as pl
from jax.experimental.pallas import tpu as pltpu

# ----------------------------- model configuration -----------------------------
B = 2            # batch
C = 3            # input channels (ViT expects 3)
IMG = 16         # spatial
PATCH = 8        # patch size -> 2x2 = 4 patches
N_PATCH = (IMG // PATCH) ** 2
S = N_PATCH + 1  # sequence length incl. CLS token
D = 32           # hidden size
NH = 2           # attention heads
DH = D // NH     # head dim
N_LAYERS = 2     # encoder layers
MLP = 64         # intermediate size
CLS_HID = 256    # classifier hidden size (nn.Linear(hidden, 256))
NUM_CLASSES = 2
LN_EPS = 1e-12   # HF ViT default layer_norm_eps
CPP = C * PATCH * PATCH   # flattened patch dim (im2col K)
BS = B * S                # batch folded into rows
F32 = jnp.float32


# ----------------------------- in-kernel helpers -----------------------------
def _layernorm(x, g, b):
    mu = jnp.mean(x, axis=-1, keepdims=True)
    var = jnp.mean((x - mu) ** 2, axis=-1, keepdims=True)
    return (x - mu) * jax.lax.rsqrt(var + LN_EPS) * g + b


# ----------------------------- fused forward kernel -----------------------------
def fused_vit_kernel(
    # inputs
    patches_ref, patch_w_ref, patch_b_ref, cls_tok_ref, pos_ref,
    ln1_g_ref, ln1_b_ref, wqkv_ref, bqkv_ref, wo_ref, bo_ref,
    ln2_g_ref, ln2_b_ref, w1_ref, b1_ref, w2_ref, b2_ref,
    lnf_g_ref, lnf_b_ref, cw1_ref, cb1_ref, cw2_ref, cb2_ref,
    # outputs
    hs_ref,       # [N_LAYERS+1, B*S, D]  per-stage hidden states
    attn_ref,     # [N_LAYERS*B*NH, S, S] attention probabilities
    cls_out_ref,  # [B, D]                CLS token after final LN
    logits_ref,   # [B, NUM_CLASSES]
    # scratch
    ctx_scratch,  # VMEM [B*S, D] — per-head context written into column slices
):
    # ---- patch embedding (conv as im2col matmul) + CLS token + positions ----
    emb = jnp.dot(patches_ref[...], patch_w_ref[...],
                  preferred_element_type=jnp.float32) + patch_b_ref[...]      # [B*NP, D]
    cls_row = cls_tok_ref[...] + pos_ref[0:1, :]                               # [1, D]
    patch_pos = pos_ref[1:, :]                                                 # [NP, D]
    for b in range(B):                                                         # static
        hs_ref[0, b * S:b * S + 1, :] = cls_row
        hs_ref[0, b * S + 1:(b + 1) * S, :] = (
            emb[b * N_PATCH:(b + 1) * N_PATCH, :] + patch_pos
        )
    x = hs_ref[0, :, :]                                                        # [B*S, D]

    scale = 1.0 / math.sqrt(DH)
    for li in range(N_LAYERS):                                                 # static
        # --- MHSA block (pre-LN), QKV fused into one matmul on [B*S, D] ---
        h = _layernorm(x, ln1_g_ref[li], ln1_b_ref[li])
        qkv = jnp.dot(h, wqkv_ref[li],
                      preferred_element_type=jnp.float32) + bqkv_ref[li]       # [B*S, 3D]
        for b in range(B):                                                     # static
            r0, r1 = b * S, (b + 1) * S
            for hh in range(NH):                                               # static
                c0, c1 = hh * DH, (hh + 1) * DH
                qh = qkv[r0:r1, c0:c1]
                kh = qkv[r0:r1, D + c0:D + c1]
                vh = qkv[r0:r1, 2 * D + c0:2 * D + c1]
                # q @ k^T without materializing a transpose
                scores = jax.lax.dot_general(
                    qh, kh, (((1,), (1,)), ((), ())),
                    preferred_element_type=jnp.float32) * scale                # [S, S]
                scores = scores - jnp.max(scores, axis=-1, keepdims=True)
                e = jnp.exp(scores)
                p = e * pl.reciprocal(jnp.sum(e, axis=-1, keepdims=True),
                                      approx=True)
                attn_ref[(li * B + b) * NH + hh, :, :] = p
                ctx_scratch[r0:r1, c0:c1] = jnp.dot(
                    p, vh, preferred_element_type=jnp.float32)
        attn_out = jnp.dot(ctx_scratch[...], wo_ref[li],
                           preferred_element_type=jnp.float32) + bo_ref[li]
        res1 = x + attn_out

        # --- MLP block (pre-LN) ---
        h2 = _layernorm(res1, ln2_g_ref[li], ln2_b_ref[li])
        inter = jnp.dot(h2, w1_ref[li],
                        preferred_element_type=jnp.float32) + b1_ref[li]
        # TODO(synk): HF ViT default is exact erf-GELU; tanh approximation kept
        # for guaranteed Mosaic lowering (~1e-3 relative activation deviation).
        inter = jax.nn.gelu(inter, approximate=True)
        mlp_out = jnp.dot(inter, w2_ref[li],
                          preferred_element_type=jnp.float32) + b2_ref[li]
        x = res1 + mlp_out
        hs_ref[li + 1, :, :] = x

    # --- final LayerNorm, CLS-token extraction, classifier head ---
    last = _layernorm(x, lnf_g_ref[...], lnf_b_ref[...])                       # [B*S, D]
    for b in range(B):                                                         # static
        cls_out_ref[b:b + 1, :] = last[b * S:b * S + 1, :]
    cls_tok = cls_out_ref[...]                                                 # [B, D]
    hcls = jnp.dot(cls_tok, cw1_ref[...],
                   preferred_element_type=jnp.float32) + cb1_ref[...]
    hcls = jnp.maximum(hcls, 0.0)            # ReLU; Dropout(0.3) is eval-mode identity
    logits_ref[...] = jnp.dot(hcls, cw2_ref[...],
                              preferred_element_type=jnp.float32) + cb2_ref[...]


def _fused_forward(patches, p):
    # Single pallas_call, no grid: every operand is a full-array VMEM block,
    # every weight stays VMEM-resident for the entire forward.
    return pl.pallas_call(
        fused_vit_kernel,
        out_shape=(
            jax.ShapeDtypeStruct((N_LAYERS + 1, BS, D), F32),        # hidden states
            jax.ShapeDtypeStruct((N_LAYERS * B * NH, S, S), F32),    # attn probs
            jax.ShapeDtypeStruct((B, D), F32),                       # cls token
            jax.ShapeDtypeStruct((B, NUM_CLASSES), F32),             # logits
        ),
        scratch_shapes=[pltpu.VMEM((BS, D), F32)],
    )(
        patches, p["patch_w"], p["patch_b"], p["cls_token"], p["pos_embed"],
        p["ln1_g"], p["ln1_b"], p["wqkv"], p["bqkv"], p["wo"], p["bo"],
        p["ln2_g"], p["ln2_b"], p["w1"], p["b1"], p["w2"], p["b2"],
        p["ln_f_g"], p["ln_f_b"], p["cls_w1"], p["cls_b1"], p["cls_w2"], p["cls_b2"],
    )


# ----------------------------- parameter init (deterministic, packed) -----------------------------
def init_params(key):
    def nrm(k, shape, scale=0.02):
        return (scale * jax.random.normal(k, shape)).astype(F32)

    keys = jax.random.split(key, 8 + N_LAYERS)
    params = {
        "patch_w": nrm(keys[0], (CPP, D)),          # patch conv as matmul weight
        "patch_b": jnp.zeros((1, D), F32),
        "cls_token": nrm(keys[1], (1, D)),
        "pos_embed": nrm(keys[2], (S, D)),
        "ln_f_g": jnp.ones((1, D), F32),
        "ln_f_b": jnp.zeros((1, D), F32),
        "cls_w1": nrm(keys[3], (D, CLS_HID)),
        "cls_b1": jnp.zeros((1, CLS_HID), F32),
        "cls_w2": nrm(keys[4], (CLS_HID, NUM_CLASSES)),
        "cls_b2": jnp.zeros((1, NUM_CLASSES), F32),
    }
    wqkv, wo, w1, w2 = [], [], [], []
    for li in range(N_LAYERS):
        lk = jax.random.split(keys[8 + li], 6)
        # fuse Q/K/V projection weights into a single [D, 3D] matrix
        wqkv.append(jnp.concatenate(
            [nrm(lk[0], (D, D)), nrm(lk[1], (D, D)), nrm(lk[2], (D, D))], axis=1))
        wo.append(nrm(lk[3], (D, D)))
        w1.append(nrm(lk[4], (D, MLP)))
        w2.append(nrm(lk[5], (MLP, D)))
    params.update({
        "ln1_g": jnp.ones((N_LAYERS, 1, D), F32),
        "ln1_b": jnp.zeros((N_LAYERS, 1, D), F32),
        "wqkv": jnp.stack(wqkv),                    # [L, D, 3D]
        "bqkv": jnp.zeros((N_LAYERS, 1, 3 * D), F32),
        "wo": jnp.stack(wo),                        # [L, D, D]
        "bo": jnp.zeros((N_LAYERS, 1, D), F32),
        "ln2_g": jnp.ones((N_LAYERS, 1, D), F32),
        "ln2_b": jnp.zeros((N_LAYERS, 1, D), F32),
        "w1": jnp.stack(w1),                        # [L, D, MLP]
        "b1": jnp.zeros((N_LAYERS, 1, MLP), F32),
        "w2": jnp.stack(w2),                        # [L, MLP, D]
        "b2": jnp.zeros((N_LAYERS, 1, D), F32),
    })
    return params


# ----------------------------- forward pass (im2col glue + fused kernel) -----------------------------
@jax.jit
def mnist_vit_forward(pixel_values, params):
    # pixel_values: [B, C, IMG, IMG] (NCHW, matches PyTorch)
    bsz = pixel_values.shape[0]
    hp = IMG // PATCH

    # patch-embedding conv (kernel=stride=PATCH) rewritten as im2col + matmul
    patches = pixel_values.reshape(bsz, C, hp, PATCH, hp, PATCH)
    patches = patches.transpose(0, 2, 4, 1, 3, 5)                 # [B, hp, wp, C, P, P]
    patches = patches.reshape(bsz * N_PATCH, CPP)                 # [B*NP, C*P*P]

    hs, attn, cls_token, logits = _fused_forward(patches, params)

    hs = hs.reshape(N_LAYERS + 1, bsz, S, D)
    attn = attn.reshape(N_LAYERS, bsz, NH, S, S)
    hidden_states = tuple(hs[i] for i in range(N_LAYERS + 1))
    attentions = tuple(attn[i] for i in range(N_LAYERS))

    return {
        "logits": logits,
        "attentions": attentions,
        "hidden_states": hidden_states,
        "cls_token": cls_token,
    }


# ----------------------------- main -----------------------------
if __name__ == "__main__":
    key = jax.random.PRNGKey(0)
    k_params, k_input = jax.random.split(key)
    params = init_params(k_params)
    pixel_values = jax.random.normal(k_input, (B, C, IMG, IMG), F32)

    out = mnist_vit_forward(pixel_values, params)
    out = jax.block_until_ready(out)

    assert out["logits"].shape == (B, NUM_CLASSES)
    assert out["cls_token"].shape == (B, D)
    assert len(out["attentions"]) == N_LAYERS
    assert out["attentions"][0].shape == (B, NH, S, S)
    assert len(out["hidden_states"]) == N_LAYERS + 1
    assert out["hidden_states"][0].shape == (B, S, D)
    assert bool(jnp.all(jnp.isfinite(out["logits"])))
    print("KERNEL_OK")
</pallas_src>

<mosaic_0001>
module attributes {stable_mosaic.version = 11 : i64} {
  func.func @fused_vit_kernel(%arg0: memref<8x192xf32, #tpu.memory_space<vmem>>, %arg1: memref<192x32xf32, #tpu.memory_space<vmem>>, %arg2: memref<1x32xf32, #tpu.memory_space<vmem>>, %arg3: memref<1x32xf32, #tpu.memory_space<vmem>>, %arg4: memref<5x32xf32, #tpu.memory_space<vmem>>, %arg5: memref<2x1x32xf32, #tpu.memory_space<vmem>>, %arg6: memref<2x1x32xf32, #tpu.memory_space<vmem>>, %arg7: memref<2x32x96xf32, #tpu.memory_space<vmem>>, %arg8: memref<2x1x96xf32, #tpu.memory_space<vmem>>, %arg9: memref<2x32x32xf32, #tpu.memory_space<vmem>>, %arg10: memref<2x1x32xf32, #tpu.memory_space<vmem>>, %arg11: memref<2x1x32xf32, #tpu.memory_space<vmem>>, %arg12: memref<2x1x32xf32, #tpu.memory_space<vmem>>, %arg13: memref<2x32x64xf32, #tpu.memory_space<vmem>>, %arg14: memref<2x1x64xf32, #tpu.memory_space<vmem>>, %arg15: memref<2x64x32xf32, #tpu.memory_space<vmem>>, %arg16: memref<2x1x32xf32, #tpu.memory_space<vmem>>, %arg17: memref<1x32xf32, #tpu.memory_space<vmem>>, %arg18: memref<1x32xf32, #tpu.memory_space<vmem>>, %arg19: memref<32x256xf32, #tpu.memory_space<vmem>>, %arg20: memref<1x256xf32, #tpu.memory_space<vmem>>, %arg21: memref<256x2xf32, #tpu.memory_space<vmem>>, %arg22: memref<1x2xf32, #tpu.memory_space<vmem>>, %arg23: memref<3x10x32xf32, #tpu.memory_space<vmem>>, %arg24: memref<8x5x5xf32, #tpu.memory_space<vmem>>, %arg25: memref<2x32xf32, #tpu.memory_space<vmem>>, %arg26: memref<2x2xf32, #tpu.memory_space<vmem>>, %arg27: memref<10x32xf32, #tpu.memory_space<vmem>>) attributes {dimension_semantics = [], scalar_prefetch = 0 : i64, scratch_operands = 1 : i64, tpu.core_type = #tpu.core_type<tc>} {
    %c0 = arith.constant 0 : index
    %c0_0 = arith.constant 0 : index
    %0 = vector.load %arg0[%c0, %c0_0] : memref<8x192xf32, #tpu.memory_space<vmem>>, vector<8x192xf32>
    %c0_1 = arith.constant 0 : index
    %c0_2 = arith.constant 0 : index
    %1 = vector.load %arg1[%c0_1, %c0_2] : memref<192x32xf32, #tpu.memory_space<vmem>>, vector<192x32xf32>
    %cst = arith.constant dense<0.000000e+00> : vector<8x32xf32>
    %2 = tpu.matmul %0, %1, %cst {dimension_numbers = #tpu.dot_dimension_numbers<[1], [0], [0], [1], [0, 0, 1, 1], [], []>} : vector<8x192xf32>, vector<192x32xf32>, vector<8x32xf32> -> vector<8x32xf32>
    %c0_3 = arith.constant 0 : index
    %c0_4 = arith.constant 0 : index
    %3 = vector.load %arg2[%c0_3, %c0_4] : memref<1x32xf32, #tpu.memory_space<vmem>>, vector<1x32xf32>
    %4 = vector.broadcast %3 : vector<1x32xf32> to vector<8x32xf32>
    %5 = arith.addf %2, %4 : vector<8x32xf32>
    %c0_5 = arith.constant 0 : index
    %c0_6 = arith.constant 0 : index
    %6 = vector.load %arg3[%c0_5, %c0_6] : memref<1x32xf32, #tpu.memory_space<vmem>>, vector<1x32xf32>
    %c0_7 = arith.constant 0 : index
    %c0_8 = arith.constant 0 : index
    %7 = vector.load %arg4[%c0_7, %c0_8] : memref<5x32xf32, #tpu.memory_space<vmem>>, vector<1x32xf32>
    %8 = arith.addf %6, %7 : vector<1x32xf32>
    %c1 = arith.constant 1 : index
    %c0_9 = arith.constant 0 : index
    %9 = vector.load %arg4[%c1, %c0_9] : memref<5x32xf32, #tpu.memory_space<vmem>>, vector<4x32xf32>
    %c0_10 = arith.constant 0 : index
    %c0_11 = arith.constant 0 : index
    %c0_12 = arith.constant 0 : index
    %10 = vector.load %arg23[%c0_10, %c0_11, %c0_12] : memref<3x10x32xf32, #tpu.memory_space<vmem>>, vector<1x1x32xf32>
    %11 = vector.shape_cast %10 : vector<1x1x32xf32> to vector<1x32xf32>
    %12 = vector.shape_cast %8 : vector<1x32xf32> to vector<1x1x32xf32>
    tpu.vector_store %arg23[%c0_10, %c0_11, %c0_12], %12 {strides = array<i32>} : memref<3x10x32xf32, #tpu.memory_space<vmem>>, vector<1x1x32xf32>,
    %13 = vector.extract_strided_slice %5 {offsets = [0, 0], sizes = [4, 32], strides = [1, 1]} : vector<8x32xf32> to vector<4x32xf32>
    %14 = arith.addf %13, %9 : vector<4x32xf32>
    %c0_13 = arith.constant 0 : index
    %c1_14 = arith.constant 1 : index
    %c0_15 = arith.constant 0 : index
    %15 = vector.load %arg23[%c0_13, %c1_14, %c0_15] : memref<3x10x32xf32, #tpu.memory_space<vmem>>, vector<1x4x32xf32>
    %16 = vector.shape_cast %15 : vector<1x4x32xf32> to vector<4x32xf32>
    %17 = vector.shape_cast %14 : vector<4x32xf32> to vector<1x4x32xf32>
    tpu.vector_store %arg23[%c0_13, %c1_14, %c0_15], %17 {strides = array<i32>} : memref<3x10x32xf32, #tpu.memory_space<vmem>>, vector<1x4x32xf32>,
    %c0_16 = arith.constant 0 : index
    %c5 = arith.constant 5 : index
    %c0_17 = arith.constant 0 : index
    %18 = vector.load %arg23[%c0_16, %c5, %c0_17] : memref<3x10x32xf32, #tpu.memory_space<vmem>>, vector<1x1x32xf32>
    %19 = vector.shape_cast %18 : vector<1x1x32xf32> to vector<1x32xf32>
    %20 = vector.shape_cast %8 : vector<1x32xf32> to vector<1x1x32xf32>
    tpu.vector_store %arg23[%c0_16, %c5, %c0_17], %20 {strides = array<i32>} : memref<3x10x32xf32, #tpu.memory_space<vmem>>, vector<1x1x32xf32>,
    %21 = vector.extract_strided_slice %5 {offsets = [4, 0], sizes = [4, 32], strides = [1, 1]} : vector<8x32xf32> to vector<4x32xf32>
    %22 = arith.addf %21, %9 : vector<4x32xf32>
    %c0_18 = arith.constant 0 : index
    %c6 = arith.constant 6 : index
    %c0_19 = arith.constant 0 : index
    %23 = vector.load %arg23[%c0_18, %c6, %c0_19] : memref<3x10x32xf32, #tpu.memory_space<vmem>>, vector<1x4x32xf32>
    %24 = vector.shape_cast %23 : vector<1x4x32xf32> to vector<4x32xf32>
    %25 = vector.shape_cast %22 : vector<4x32xf32> to vector<1x4x32xf32>
    tpu.vector_store %arg23[%c0_18, %c6, %c0_19], %25 {strides = array<i32>} : memref<3x10x32xf32, #tpu.memory_space<vmem>>, vector<1x4x32xf32>,
    %c0_20 = arith.constant 0 : index
    %c0_21 = arith.constant 0 : index
    %c0_22 = arith.constant 0 : index
    %26 = vector.load %arg23[%c0_20, %c0_21, %c0_22] : memref<3x10x32xf32, #tpu.memory_space<vmem>>, vector<1x10x32xf32>
    %27 = vector.shape_cast %26 : vector<1x10x32xf32> to vector<10x32xf32>
    %c0_23 = arith.constant 0 : index
    %c0_24 = arith.constant 0 : index
    %c0_25 = arith.constant 0 : index
    %28 = vector.load %arg5[%c0_23, %c0_24, %c0_25] : memref<2x1x32xf32, #tpu.memory_space<vmem>>, vector<1x1x32xf32>
    %29 = vector.shape_cast %28 : vector<1x1x32xf32> to vector<1x32xf32>
    %c0_26 = arith.constant 0 : index
    %c0_27 = arith.constant 0 : index
    %c0_28 = arith.constant 0 : index
    %30 = vector.load %arg6[%c0_26, %c0_27, %c0_28] : memref<2x1x32xf32, #tpu.memory_space<vmem>>, vector<1x1x32xf32>
    %31 = vector.shape_cast %30 : vector<1x1x32xf32> to vector<1x32xf32>
    %cst_29 = arith.constant dense<0.000000e+00> : vector<10xf32>
    %32 = vector.multi_reduction <add>, %27, %cst_29 [1] : vector<10x32xf32> to vector<10xf32>
    %33 = vector.shape_cast %32 : vector<10xf32> to vector<10x1xf32>
    %cst_30 = arith.constant 3.200000e+01 : f32
    %34 = vector.broadcast %cst_30 : f32 to vector<10x1xf32>
    %35 = arith.divf %33, %34 : vector<10x1xf32>
    %36 = vector.broadcast %35 : vector<10x1xf32> to vector<10x32xf32>
    %37 = arith.subf %27, %36 : vector<10x32xf32>
    %38 = arith.mulf %37, %37 : vector<10x32xf32>
    %cst_31 = arith.constant dense<0.000000e+00> : vector<10xf32>
    %39 = vector.multi_reduction <add>, %38, %cst_31 [1] : vector<10x32xf32> to vector<10xf32>
    %40 = vector.shape_cast %39 : vector<10xf32> to vector<10x1xf32>
    %cst_32 = arith.constant 3.200000e+01 : f32
    %41 = vector.broadcast %cst_32 : f32 to vector<10x1xf32>
    %42 = arith.divf %40, %41 : vector<10x1xf32>
    %43 = vector.broadcast %35 : vector<10x1xf32> to vector<10x32xf32>
    %44 = arith.subf %27, %43 : vector<10x32xf32>
    %cst_33 = arith.constant 9.99999996E-13 : f32
    %45 = vector.broadcast %cst_33 : f32 to vector<10x1xf32>
    %46 = arith.addf %42, %45 : vector<10x1xf32>
    %47 = math.rsqrt %46 : vector<10x1xf32>
    %48 = vector.broadcast %47 : vector<10x1xf32> to vector<10x32xf32>
    %49 = arith.mulf %44, %48 : vector<10x32xf32>
    %50 = vector.broadcast %29 : vector<1x32xf32> to vector<10x32xf32>
    %51 = arith.mulf %49, %50 : vector<10x32xf32>
    %52 = vector.broadcast %31 : vector<1x32xf32> to vector<10x32xf32>
    %53 = arith.addf %51, %52 : vector<10x32xf32>
    %c0_34 = arith.constant 0 : index
    %c0_35 = arith.constant 0 : index
    %c0_36 = arith.constant 0 : index
    %54 = vector.load %arg7[%c0_34, %c0_35, %c0_36] : memref<2x32x96xf32, #tpu.memory_space<vmem>>, vector<1x32x96xf32>
    %55 = vector.shape_cast %54 : vector<1x32x96xf32> to vector<32x96xf32>
    %cst_37 = arith.constant dense<0.000000e+00> : vector<10x96xf32>
    %56 = tpu.matmul %53, %55, %cst_37 {dimension_numbers = #tpu.dot_dimension_numbers<[1], [0], [0], [1], [0, 0, 1, 1], [], []>} : vector<10x32xf32>, vector<32x96xf32>, vector<10x96xf32> -> vector<10x96xf32>
    %c0_38 = arith.constant 0 : index
    %c0_39 = arith.constant 0 : index
    %c0_40 = arith.constant 0 : index
    %57 = vector.load %arg8[%c0_38, %c0_39, %c0_40] : memref<2x1x96xf32, #tpu.memory_space<vmem>>, vector<1x1x96xf32>
    %58 = vector.shape_cast %57 : vector<1x1x96xf32> to vector<1x96xf32>
    %59 = vector.broadcast %58 : vector<1x96xf32> to vector<10x96xf32>
    %60 = arith.addf %56, %59 : vector<10x96xf32>
    %61 = vector.extract_strided_slice %60 {offsets = [0, 0], sizes = [5, 16], strides = [1, 1]} : vector<10x96xf32> to vector<5x16xf32>
    %62 = vector.extract_strided_slice %60 {offsets = [0, 32], sizes = [5, 16], strides = [1, 1]} : vector<10x96xf32> to vector<5x16xf32>
    %63 = vector.extract_strided_slice %60 {offsets = [0, 64], sizes = [5, 16], strides = [1, 1]} : vector<10x96xf32> to vector<5x16xf32>
    %cst_41 = arith.constant dense<0.000000e+00> : vector<5x5xf32>
    %64 = tpu.matmul %61, %62, %cst_41 {dimension_numbers = #tpu.dot_dimension_numbers<[1], [1], [0], [0], [0, 0, 1, 0], [], []>} : vector<5x16xf32>, vector<5x16xf32>, vector<5x5xf32> -> vector<5x5xf32>
    %cst_42 = arith.constant 2.500000e-01 : f32
    %65 = vector.broadcast %cst_42 : f32 to vector<5x5xf32>
    %66 = arith.mulf %64, %65 : vector<5x5xf32>
    %cst_43 = arith.constant dense<0xFF800000> : vector<5xf32>
    %67 = vector.multi_reduction <maximumf>, %66, %cst_43 [1] : vector<5x5xf32> to vector<5xf32>
    %68 = vector.shape_cast %67 : vector<5xf32> to vector<5x1xf32>
    %69 = vector.broadcast %68 : vector<5x1xf32> to vector<5x5xf32>
    %70 = arith.subf %66, %69 : vector<5x5xf32>
    %71 = math.exp %70 : vector<5x5xf32>
    %cst_44 = arith.constant dense<0.000000e+00> : vector<5xf32>
    %72 = vector.multi_reduction <add>, %71, %cst_44 [1] : vector<5x5xf32> to vector<5xf32>
    %73 = vector.shape_cast %72 : vector<5xf32> to vector<5x1xf32>
    %74 = tpu.reciprocal %73 {approx = true} : vector<5x1xf32> -> vector<5x1xf32>
    %75 = vector.broadcast %74 : vector<5x1xf32> to vector<5x5xf32>
    %76 = arith.mulf %71, %75 : vector<5x5xf32>
    %c0_45 = arith.constant 0 : index
    %c0_46 = arith.constant 0 : index
    %c0_47 = arith.constant 0 : index
    %77 = vector.load %arg24[%c0_45, %c0_46, %c0_47] : memref<8x5x5xf32, #tpu.memory_space<vmem>>, vector<1x5x5xf32>
    %78 = vector.shape_cast %77 : vector<1x5x5xf32> to vector<5x5xf32>
    %79 = vector.shape_cast %76 : vector<5x5xf32> to vector<1x5x5xf32>
    tpu.vector_store %arg24[%c0_45, %c0_46, %c0_47], %79 {strides = array<i32>} : memref<8x5x5xf32, #tpu.memory_space<vmem>>, vector<1x5x5xf32>,
    %cst_48 = arith.constant dense<0.000000e+00> : vector<5x16xf32>
    %80 = tpu.matmul %76, %63, %cst_48 {dimension_numbers = #tpu.dot_dimension_numbers<[1], [0], [0], [1], [0, 0, 1, 1], [], []>} : vector<5x5xf32>, vector<5x16xf32>, vector<5x16xf32> -> vector<5x16xf32>
    %c0_49 = arith.constant 0 : index
    %c0_50 = arith.constant 0 : index
    %81 = vector.load %arg27[%c0_49, %c0_50] : memref<10x32xf32, #tpu.memory_space<vmem>>, vector<5x16xf32>
    tpu.vector_store %arg27[%c0_49, %c0_50], %80 {strides = array<i32>} : memref<10x32xf32, #tpu.memory_space<vmem>>, vector<5x16xf32>,
    %82 = vector.extract_strided_slice %60 {offsets = [0, 16], sizes = [5, 16], strides = [1, 1]} : vector<10x96xf32> to vector<5x16xf32>
    %83 = vector.extract_strided_slice %60 {offsets = [0, 48], sizes = [5, 16], strides = [1, 1]} : vector<10x96xf32> to vector<5x16xf32>
    %84 = vector.extract_strided_slice %60 {offsets = [0, 80], sizes = [5, 16], strides = [1, 1]} : vector<10x96xf32> to vector<5x16xf32>
    %cst_51 = arith.constant dense<0.000000e+00> : vector<5x5xf32>
    %85 = tpu.matmul %82, %83, %cst_51 {dimension_numbers = #tpu.dot_dimension_numbers<[1], [1], [0], [0], [0, 0, 1, 0], [], []>} : vector<5x16xf32>, vector<5x16xf32>, vector<5x5xf32> -> vector<5x5xf32>
    %cst_52 = arith.constant 2.500000e-01 : f32
    %86 = vector.broadcast %cst_52 : f32 to vector<5x5xf32>
    %87 = arith.mulf %85, %86 : vector<5x5xf32>
    %cst_53 = arith.constant dense<0xFF800000> : vector<5xf32>
    %88 = vector.multi_reduction <maximumf>, %87, %cst_53 [1] : vector<5x5xf32> to vector<5xf32>
    %89 = vector.shape_cast %88 : vector<5xf32> to vector<5x1xf32>
    %90 = vector.broadcast %89 : vector<5x1xf32> to vector<5x5xf32>
    %91 = arith.subf %87, %90 : vector<5x5xf32>
    %92 = math.exp %91 : vector<5x5xf32>
    %cst_54 = arith.constant dense<0.000000e+00> : vector<5xf32>
    %93 = vector.multi_reduction <add>, %92, %cst_54 [1] : vector<5x5xf32> to vector<5xf32>
    %94 = vector.shape_cast %93 : vector<5xf32> to vector<5x1xf32>
    %95 = tpu.reciprocal %94 {approx = true} : vector<5x1xf32> -> vector<5x1xf32>
    %96 = vector.broadcast %95 : vector<5x1xf32> to vector<5x5xf32>
    %97 = arith.mulf %92, %96 : vector<5x5xf32>
    %c1_55 = arith.constant 1 : index
    %c0_56 = arith.constant 0 : index
    %c0_57 = arith.constant 0 : index
    %98 = vector.load %arg24[%c1_55, %c0_56, %c0_57] : memref<8x5x5xf32, #tpu.memory_space<vmem>>, vector<1x5x5xf32>
    %99 = vector.shape_cast %98 : vector<1x5x5xf32> to vector<5x5xf32>
    %100 = vector.shape_cast %97 : vector<5x5xf32> to vector<1x5x5xf32>
    tpu.vector_store %arg24[%c1_55, %c0_56, %c0_57], %100 {strides = array<i32>} : memref<8x5x5xf32, #tpu.memory_space<vmem>>, vector<1x5x5xf32>,
    %cst_58 = arith.constant dense<0.000000e+00> : vector<5x16xf32>
    %101 = tpu.matmul %97, %84, %cst_58 {dimension_numbers = #tpu.dot_dimension_numbers<[1], [0], [0], [1], [0, 0, 1, 1], [], []>} : vector<5x5xf32>, vector<5x16xf32>, vector<5x16xf32> -> vector<5x16xf32>
    %c0_59 = arith.constant 0 : index
    %c16 = arith.constant 16 : index
    %102 = vector.load %arg27[%c0_59, %c16] : memref<10x32xf32, #tpu.memory_space<vmem>>, vector<5x16xf32>
    tpu.vector_store %arg27[%c0_59, %c16], %101 {strides = array<i32>} : memref<10x32xf32, #tpu.memory_space<vmem>>, vector<5x16xf32>,
    %103 = vector.extract_strided_slice %60 {offsets = [5, 0], sizes = [5, 16], strides = [1, 1]} : vector<10x96xf32> to vector<5x16xf32>
    %104 = vector.extract_strided_slice %60 {offsets = [5, 32], sizes = [5, 16], strides = [1, 1]} : vector<10x96xf32> to vector<5x16xf32>
    %105 = vector.extract_strided_slice %60 {offsets = [5, 64], sizes = [5, 16], strides = [1, 1]} : vector<10x96xf32> to vector<5x16xf32>
    %cst_60 = arith.constant dense<0.000000e+00> : vector<5x5xf32>
    %106 = tpu.matmul %103, %104, %cst_60 {dimension_numbers = #tpu.dot_dimension_numbers<[1], [1], [0], [0], [0, 0, 1, 0], [], []>} : vector<5x16xf32>, vector<5x16xf32>, vector<5x5xf32> -> vector<5x5xf32>
    %cst_61 = arith.constant 2.500000e-01 : f32
    %107 = vector.broadcast %cst_61 : f32 to vector<5x5xf32>
    %108 = arith.mulf %106, %107 : vector<5x5xf32>
    %cst_62 = arith.constant dense<0xFF800000> : vector<5xf32>
    %109 = vector.multi_reduction <maximumf>, %108, %cst_62 [1] : vector<5x5xf32> to vector<5xf32>
    %110 = vector.shape_cast %109 : vector<5xf32> to vector<5x1xf32>
    %111 = vector.broadcast %110 : vector<5x1xf32> to vector<5x5xf32>
    %112 = arith.subf %108, %111 : vector<5x5xf32>
    %113 = math.exp %112 : vector<5x5xf32>
    %cst_63 = arith.constant dense<0.000000e+00> : vector<5xf32>
    %114 = vector.multi_reduction <add>, %113, %cst_63 [1] : vector<5x5xf32> to vector<5xf32>
    %115 = vector.shape_cast %114 : vector<5xf32> to vector<5x1xf32>
    %116 = tpu.reciprocal %115 {approx = true} : vector<5x1xf32> -> vector<5x1xf32>
    %117 = vector.broadcast %116 : vector<5x1xf32> to vector<5x5xf32>
    %118 = arith.mulf %113, %117 : vector<5x5xf32>
    %c2 = arith.constant 2 : index
    %c0_64 = arith.constant 0 : index
    %c0_65 = arith.constant 0 : index
    %119 = vector.load %arg24[%c2, %c0_64, %c0_65] : memref<8x5x5xf32, #tpu.memory_space<vmem>>, vector<1x5x5xf32>
    %120 = vector.shape_cast %119 : vector<1x5x5xf32> to vector<5x5xf32>
    %121 = vector.shape_cast %118 : vector<5x5xf32> to vector<1x5x5xf32>
    tpu.vector_store %arg24[%c2, %c0_64, %c0_65], %121 {strides = array<i32>} : memref<8x5x5xf32, #tpu.memory_space<vmem>>, vector<1x5x5xf32>,
    %cst_66 = arith.constant dense<0.000000e+00> : vector<5x16xf32>
    %122 = tpu.matmul %118, %105, %cst_66 {dimension_numbers = #tpu.dot_dimension_numbers<[1], [0], [0], [1], [0, 0, 1, 1], [], []>} : vector<5x5xf32>, vector<5x16xf32>, vector<5x16xf32> -> vector<5x16xf32>
    %c5_67 = arith.constant 5 : index
    %c0_68 = arith.constant 0 : index
    %123 = vector.load %arg27[%c5_67, %c0_68] : memref<10x32xf32, #tpu.memory_space<vmem>>, vector<5x16xf32>
    tpu.vector_store %arg27[%c5_67, %c0_68], %122 {strides = array<i32>} : memref<10x32xf32, #tpu.memory_space<vmem>>, vector<5x16xf32>,
    %124 = vector.extract_strided_slice %60 {offsets = [5, 16], sizes = [5, 16], strides = [1, 1]} : vector<10x96xf32> to vector<5x16xf32>
    %125 = vector.extract_strided_slice %60 {offsets = [5, 48], sizes = [5, 16], strides = [1, 1]} : vector<10x96xf32> to vector<5x16xf32>
    %126 = vector.extract_strided_slice %60 {offsets = [5, 80], sizes = [5, 16], strides = [1, 1]} : vector<10x96xf32> to vector<5x16xf32>
    %cst_69 = arith.constant dense<0.000000e+00> : vector<5x5xf32>
    %127 = tpu.matmul %124, %125, %cst_69 {dimension_numbers = #tpu.dot_dimension_numbers<[1], [1], [0], [0], [0, 0, 1, 0], [], []>} : vector<5x16xf32>, vector<5x16xf32>, vector<5x5xf32> -> vector<5x5xf32>
    %cst_70 = arith.constant 2.500000e-01 : f32
    %128 = vector.broadcast %cst_70 : f32 to vector<5x5xf32>
    %129 = arith.mulf %127, %128 : vector<5x5xf32>
    %cst_71 = arith.constant dense<0xFF800000> : vector<5xf32>
    %130 = vector.multi_reduction <maximumf>, %129, %cst_71 [1] : vector<5x5xf32> to vector<5xf32>
    %131 = vector.shape_cast %130 : vector<5xf32> to vector<5x1xf32>
    %132 = vector.broadcast %131 : vector<5x1xf32> to vector<5x5xf32>
    %133 = arith.subf %129, %132 : vector<5x5xf32>
    %134 = math.exp %133 : vector<5x5xf32>
    %cst_72 = arith.constant dense<0.000000e+00> : vector<5xf32>
    %135 = vector.multi_reduction <add>, %134, %cst_72 [1] : vector<5x5xf32> to vector<5xf32>
    %136 = vector.shape_cast %135 : vector<5xf32> to vector<5x1xf32>
    %137 = tpu.reciprocal %136 {approx = true} : vector<5x1xf32> -> vector<5x1xf32>
    %138 = vector.broadcast %137 : vector<5x1xf32> to vector<5x5xf32>
    %139 = arith.mulf %134, %138 : vector<5x5xf32>
    %c3 = arith.constant 3 : index
    %c0_73 = arith.constant 0 : index
    %c0_74 = arith.constant 0 : index
    %140 = vector.load %arg24[%c3, %c0_73, %c0_74] : memref<8x5x5xf32, #tpu.memory_space<vmem>>, vector<1x5x5xf32>
    %141 = vector.shape_cast %140 : vector<1x5x5xf32> to vector<5x5xf32>
    %142 = vector.shape_cast %139 : vector<5x5xf32> to vector<1x5x5xf32>
    tpu.vector_store %arg24[%c3, %c0_73, %c0_74], %142 {strides = array<i32>} : memref<8x5x5xf32, #tpu.memory_space<vmem>>, vector<1x5x5xf32>,
    %cst_75 = arith.constant dense<0.000000e+00> : vector<5x16xf32>
    %143 = tpu.matmul %139, %126, %cst_75 {dimension_numbers = #tpu.dot_dimension_numbers<[1], [0], [0], [1], [0, 0, 1, 1], [], []>} : vector<5x5xf32>, vector<5x16xf32>, vector<5x16xf32> -> vector<5x16xf32>
    %c5_76 = arith.constant 5 : index
    %c16_77 = arith.constant 16 : index
    %144 = vector.load %arg27[%c5_76, %c16_77] : memref<10x32xf32, #tpu.memory_space<vmem>>, vector<5x16xf32>
    tpu.vector_store %arg27[%c5_76, %c16_77], %143 {strides = array<i32>} : memref<10x32xf32, #tpu.memory_space<vmem>>, vector<5x16xf32>,
    %c0_78 = arith.constant 0 : index
    %c0_79 = arith.constant 0 : index
    %145 = vector.load %arg27[%c0_78, %c0_79] : memref<10x32xf32, #tpu.memory_space<vmem>>, vector<10x32xf32>
    %c0_80 = arith.constant 0 : index
    %c0_81 = arith.constant 0 : index
    %c0_82 = arith.constant 0 : index
    %146 = vector.load %arg9[%c0_80, %c0_81, %c0_82] : memref<2x32x32xf32, #tpu.memory_space<vmem>>, vector<1x32x32xf32>
    %147 = vector.shape_cast %146 : vector<1x32x32xf32> to vector<32x32xf32>
    %cst_83 = arith.constant dense<0.000000e+00> : vector<10x32xf32>
    %148 = tpu.matmul %145, %147, %cst_83 {dimension_numbers = #tpu.dot_dimension_numbers<[1], [0], [0], [1], [0, 0, 1, 1], [], []>} : vector<10x32xf32>, vector<32x32xf32>, vector<10x32xf32> -> vector<10x32xf32>
    %c0_84 = arith.constant 0 : index
    %c0_85 = arith.constant 0 : index
    %c0_86 = arith.constant 0 : index
    %149 = vector.load %arg10[%c0_84, %c0_85, %c0_86] : memref<2x1x32xf32, #tpu.memory_space<vmem>>, vector<1x1x32xf32>
    %150 = vector.shape_cast %149 : vector<1x1x32xf32> to vector<1x32xf32>
    %151 = vector.broadcast %150 : vector<1x32xf32> to vector<10x32xf32>
    %152 = arith.addf %148, %151 : vector<10x32xf32>
    %153 = arith.addf %27, %152 : vector<10x32xf32>
    %c0_87 = arith.constant 0 : index
    %c0_88 = arith.constant 0 : index
    %c0_89 = arith.constant 0 : index
    %154 = vector.load %arg11[%c0_87, %c0_88, %c0_89] : memref<2x1x32xf32, #tpu.memory_space<vmem>>, vector<1x1x32xf32>
    %155 = vector.shape_cast %154 : vector<1x1x32xf32> to vector<1x32xf32>
    %c0_90 = arith.constant 0 : index
    %c0_91 = arith.constant 0 : index
    %c0_92 = arith.constant 0 : index
    %156 = vector.load %arg12[%c0_90, %c0_91, %c0_92] : memref<2x1x32xf32, #tpu.memory_space<vmem>>, vector<1x1x32xf32>
    %157 = vector.shape_cast %156 : vector<1x1x32xf32> to vector<1x32xf32>
    %cst_93 = arith.constant dense<0.000000e+00> : vector<10xf32>
    %158 = vector.multi_reduction <add>, %153, %cst_93 [1] : vector<10x32xf32> to vector<10xf32>
    %159 = vector.shape_cast %158 : vector<10xf32> to vector<10x1xf32>
    %cst_94 = arith.constant 3.200000e+01 : f32
    %160 = vector.broadcast %cst_94 : f32 to vector<10x1xf32>
    %161 = arith.divf %159, %160 : vector<10x1xf32>
    %162 = vector.broadcast %161 : vector<10x1xf32> to vector<10x32xf32>
    %163 = arith.subf %153, %162 : vector<10x32xf32>
    %164 = arith.mulf %163, %163 : vector<10x32xf32>
    %cst_95 = arith.constant dense<0.000000e+00> : vector<10xf32>
    %165 = vector.multi_reduction <add>, %164, %cst_95 [1] : vector<10x32xf32> to vector<10xf32>
    %166 = vector.shape_cast %165 : vector<10xf32> to vector<10x1xf32>
    %cst_96 = arith.constant 3.200000e+01 : f32
    %167 = vector.broadcast %cst_96 : f32 to vector<10x1xf32>
    %168 = arith.divf %166, %167 : vector<10x1xf32>
    %169 = vector.broadcast %161 : vector<10x1xf32> to vector<10x32xf32>
    %170 = arith.subf %153, %169 : vector<10x32xf32>
    %cst_97 = arith.constant 9.99999996E-13 : f32
    %171 = vector.broadcast %cst_97 : f32 to vector<10x1xf32>
    %172 = arith.addf %168, %171 : vector<10x1xf32>
    %173 = math.rsqrt %172 : vector<10x1xf32>
    %174 = vector.broadcast %173 : vector<10x1xf32> to vector<10x32xf32>
    %175 = arith.mulf %170, %174 : vector<10x32xf32>
    %176 = vector.broadcast %155 : vector<1x32xf32> to vector<10x32xf32>
    %177 = arith.mulf %175, %176 : vector<10x32xf32>
    %178 = vector.broadcast %157 : vector<1x32xf32> to vector<10x32xf32>
    %179 = arith.addf %177, %178 : vector<10x32xf32>
    %c0_98 = arith.constant 0 : index
    %c0_99 = arith.constant 0 : index
    %c0_100 = arith.constant 0 : index
    %180 = vector.load %arg13[%c0_98, %c0_99, %c0_100] : memref<2x32x64xf32, #tpu.memory_space<vmem>>, vector<1x32x64xf32>
    %181 = vector.shape_cast %180 : vector<1x32x64xf32> to vector<32x64xf32>
    %cst_101 = arith.constant dense<0.000000e+00> : vector<10x64xf32>
    %182 = tpu.matmul %179, %181, %cst_101 {dimension_numbers = #tpu.dot_dimension_numbers<[1], [0], [0], [1], [0, 0, 1, 1], [], []>} : vector<10x32xf32>, vector<32x64xf32>, vector<10x64xf32> -> vector<10x64xf32>
    %c0_102 = arith.constant 0 : index
    %c0_103 = arith.constant 0 : index
    %c0_104 = arith.constant 0 : index
    %183 = vector.load %arg14[%c0_102, %c0_103, %c0_104] : memref<2x1x64xf32, #tpu.memory_space<vmem>>, vector<1x1x64xf32>
    %184 = vector.shape_cast %183 : vector<1x1x64xf32> to vector<1x64xf32>
    %185 = vector.broadcast %184 : vector<1x64xf32> to vector<10x64xf32>
    %186 = arith.addf %182, %185 : vector<10x64xf32>
    %187 = arith.mulf %186, %186 : vector<10x64xf32>
    %188 = arith.mulf %186, %187 : vector<10x64xf32>
    %cst_105 = arith.constant 4.471500e-02 : f32
    %189 = vector.broadcast %cst_105 : f32 to vector<10x64xf32>
    %190 = arith.mulf %189, %188 : vector<10x64xf32>
    %191 = arith.addf %186, %190 : vector<10x64xf32>
    %cst_106 = arith.constant 0.797884583 : f32
    %192 = vector.broadcast %cst_106 : f32 to vector<10x64xf32>
    %193 = arith.mulf %192, %191 : vector<10x64xf32>
    %194 = math.tanh %193 : vector<10x64xf32>
    %cst_107 = arith.constant 1.000000e+00 : f32
    %195 = vector.broadcast %cst_107 : f32 to vector<10x64xf32>
    %196 = arith.addf %195, %194 : vector<10x64xf32>
    %cst_108 = arith.constant 5.000000e-01 : f32
    %197 = vector.broadcast %cst_108 : f32 to vector<10x64xf32>
    %198 = arith.mulf %197, %196 : vector<10x64xf32>
    %199 = arith.mulf %186, %198 : vector<10x64xf32>
    %c0_109 = arith.constant 0 : index
    %c0_110 = arith.constant 0 : index
    %c0_111 = arith.constant 0 : index
    %200 = vector.load %arg15[%c0_109, %c0_110, %c0_111] : memref<2x64x32xf32, #tpu.memory_space<vmem>>, vector<1x64x32xf32>
    %201 = vector.shape_cast %200 : vector<1x64x32xf32> to vector<64x32xf32>
    %cst_112 = arith.constant dense<0.000000e+00> : vector<10x32xf32>
    %202 = tpu.matmul %199, %201, %cst_112 {dimension_numbers = #tpu.dot_dimension_numbers<[1], [0], [0], [1], [0, 0, 1, 1], [], []>} : vector<10x64xf32>, vector<64x32xf32>, vector<10x32xf32> -> vector<10x32xf32>
    %c0_113 = arith.constant 0 : index
    %c0_114 = arith.constant 0 : index
    %c0_115 = arith.constant 0 : index
    %203 = vector.load %arg16[%c0_113, %c0_114, %c0_115] : memref<2x1x32xf32, #tpu.memory_space<vmem>>, vector<1x1x32xf32>
    %204 = vector.shape_cast %203 : vector<1x1x32xf32> to vector<1x32xf32>
    %205 = vector.broadcast %204 : vector<1x32xf32> to vector<10x32xf32>
    %206 = arith.addf %202, %205 : vector<10x32xf32>
    %207 = arith.addf %153, %206 : vector<10x32xf32>
    %c1_116 = arith.constant 1 : index
    %c0_117 = arith.constant 0 : index
    %c0_118 = arith.constant 0 : index
    %208 = vector.load %arg23[%c1_116, %c0_117, %c0_118] : memref<3x10x32xf32, #tpu.memory_space<vmem>>, vector<1x10x32xf32>
    %209 = vector.shape_cast %208 : vector<1x10x32xf32> to vector<10x32xf32>
    %210 = vector.shape_cast %207 : vector<10x32xf32> to vector<1x10x32xf32>
    tpu.vector_store %arg23[%c1_116, %c0_117, %c0_118], %210 {strides = array<i32>} : memref<3x10x32xf32, #tpu.memory_space<vmem>>, vector<1x10x32xf32>,
    %c1_119 = arith.constant 1 : index
    %c0_120 = arith.constant 0 : index
    %c0_121 = arith.constant 0 : index
    %211 = vector.load %arg5[%c1_119, %c0_120, %c0_121] : memref<2x1x32xf32, #tpu.memory_space<vmem>>, vector<1x1x32xf32>
    %212 = vector.shape_cast %211 : vector<1x1x32xf32> to vector<1x32xf32>
    %c1_122 = arith.constant 1 : index
    %c0_123 = arith.constant 0 : index
    %c0_124 = arith.constant 0 : index
    %213 = vector.load %arg6[%c1_122, %c0_123, %c0_124] : memref<2x1x32xf32, #tpu.memory_space<vmem>>, vector<1x1x32xf32>
    %214 = vector.shape_cast %213 : vector<1x1x32xf32> to vector<1x32xf32>
    %cst_125 = arith.constant dense<0.000000e+00> : vector<10xf32>
    %215 = vector.multi_reduction <add>, %207, %cst_125 [1] : vector<10x32xf32> to vector<10xf32>
    %216 = vector.shape_cast %215 : vector<10xf32> to vector<10x1xf32>
    %cst_126 = arith.constant 3.200000e+01 : f32
    %217 = vector.broadcast %cst_126 : f32 to vector<10x1xf32>
    %218 = arith.divf %216, %217 : vector<10x1xf32>
    %219 = vector.broadcast %218 : vector<10x1xf32> to vector<10x32xf32>
    %220 = arith.subf %207, %219 : vector<10x32xf32>
    %221 = arith.mulf %220, %220 : vector<10x32xf32>
    %cst_127 = arith.constant dense<0.000000e+00> : vector<10xf32>
    %222 = vector.multi_reduction <add>, %221, %cst_127 [1] : vector<10x32xf32> to vector<10xf32>
    %223 = vector.shape_cast %222 : vector<10xf32> to vector<10x1xf32>
    %cst_128 = arith.constant 3.200000e+01 : f32
    %224 = vector.broadcast %cst_128 : f32 to vector<10x1xf32>
    %225 = arith.divf %223, %224 : vector<10x1xf32>
    %226 = vector.broadcast %218 : vector<10x1xf32> to vector<10x32xf32>
    %227 = arith.subf %207, %226 : vector<10x32xf32>
    %cst_129 = arith.constant 9.99999996E-13 : f32
    %228 = vector.broadcast %cst_129 : f32 to vector<10x1xf32>
    %229 = arith.addf %225, %228 : vector<10x1xf32>
    %230 = math.rsqrt %229 : vector<10x1xf32>
    %231 = vector.broadcast %230 : vector<10x1xf32> to vector<10x32xf32>
    %232 = arith.mulf %227, %231 : vector<10x32xf32>
    %233 = vector.broadcast %212 : vector<1x32xf32> to vector<10x32xf32>
    %234 = arith.mulf %232, %233 : vector<10x32xf32>
    %235 = vector.broadcast %214 : vector<1x32xf32> to vector<10x32xf32>
    %236 = arith.addf %234, %235 : vector<10x32xf32>
    %c1_130 = arith.constant 1 : index
    %c0_131 = arith.constant 0 : index
    %c0_132 = arith.constant 0 : index
    %237 = vector.load %arg7[%c1_130, %c0_131, %c0_132] : memref<2x32x96xf32, #tpu.memory_space<vmem>>, vector<1x32x96xf32>
    %238 = vector.shape_cast %237 : vector<1x32x96xf32> to vector<32x96xf32>
    %cst_133 = arith.constant dense<0.000000e+00> : vector<10x96xf32>
    %239 = tpu.matmul %236, %238, %cst_133 {dimension_numbers = #tpu.dot_dimension_numbers<[1], [0], [0], [1], [0, 0, 1, 1], [], []>} : vector<10x32xf32>, vector<32x96xf32>, vector<10x96xf32> -> vector<10x96xf32>
    %c1_134 = arith.constant 1 : index
    %c0_135 = arith.constant 0 : index
    %c0_136 = arith.constant 0 : index
    %240 = vector.load %arg8[%c1_134, %c0_135, %c0_136] : memref<2x1x96xf32, #tpu.memory_space<vmem>>, vector<1x1x96xf32>
    %241 = vector.shape_cast %240 : vector<1x1x96xf32> to vector<1x96xf32>
    %242 = vector.broadcast %241 : vector<1x96xf32> to vector<10x96xf32>
    %243 = arith.addf %239, %242 : vector<10x96xf32>
    %244 = vector.extract_strided_slice %243 {offsets = [0, 0], sizes = [5, 16], strides = [1, 1]} : vector<10x96xf32> to vector<5x16xf32>
    %245 = vector.extract_strided_slice %243 {offsets = [0, 32], sizes = [5, 16], strides = [1, 1]} : vector<10x96xf32> to vector<5x16xf32>
    %246 = vector.extract_strided_slice %243 {offsets = [0, 64], sizes = [5, 16], strides = [1, 1]} : vector<10x96xf32> to vector<5x16xf32>
    %cst_137 = arith.constant dense<0.000000e+00> : vector<5x5xf32>
    %247 = tpu.matmul %244, %245, %cst_137 {dimension_numbers = #tpu.dot_dimension_numbers<[1], [1], [0], [0], [0, 0, 1, 0], [], []>} : vector<5x16xf32>, vector<5x16xf32>, vector<5x5xf32> -> vector<5x5xf32>
    %cst_138 = arith.constant 2.500000e-01 : f32
    %248 = vector.broadcast %cst_138 : f32 to vector<5x5xf32>
    %249 = arith.mulf %247, %248 : vector<5x5xf32>
    %cst_139 = arith.constant dense<0xFF800000> : vector<5xf32>
    %250 = vector.multi_reduction <maximumf>, %249, %cst_139 [1] : vector<5x5xf32> to vector<5xf32>
    %251 = vector.shape_cast %250 : vector<5xf32> to vector<5x1xf32>
    %252 = vector.broadcast %251 : vector<5x1xf32> to vector<5x5xf32>
    %253 = arith.subf %249, %252 : vector<5x5xf32>
    %254 = math.exp %253 : vector<5x5xf32>
    %cst_140 = arith.constant dense<0.000000e+00> : vector<5xf32>
    %255 = vector.multi_reduction <add>, %254, %cst_140 [1] : vector<5x5xf32> to vector<5xf32>
    %256 = vector.shape_cast %255 : vector<5xf32> to vector<5x1xf32>
    %257 = tpu.reciprocal %256 {approx = true} : vector<5x1xf32> -> vector<5x1xf32>
    %258 = vector.broadcast %257 : vector<5x1xf32> to vector<5x5xf32>
    %259 = arith.mulf %254, %258 : vector<5x5xf32>
    %c4 = arith.constant 4 : index
    %c0_141 = arith.constant 0 : index
    %c0_142 = arith.constant 0 : index
    %260 = vector.load %arg24[%c4, %c0_141, %c0_142] : memref<8x5x5xf32, #tpu.memory_space<vmem>>, vector<1x5x5xf32>
    %261 = vector.shape_cast %260 : vector<1x5x5xf32> to vector<5x5xf32>
    %262 = vector.shape_cast %259 : vector<5x5xf32> to vector<1x5x5xf32>
    tpu.vector_store %arg24[%c4, %c0_141, %c0_142], %262 {strides = array<i32>} : memref<8x5x5xf32, #tpu.memory_space<vmem>>, vector<1x5x5xf32>,
    %cst_143 = arith.constant dense<0.000000e+00> : vector<5x16xf32>
    %263 = tpu.matmul %259, %246, %cst_143 {dimension_numbers = #tpu.dot_dimension_numbers<[1], [0], [0], [1], [0, 0, 1, 1], [], []>} : vector<5x5xf32>, vector<5x16xf32>, vector<5x16xf32> -> vector<5x16xf32>
    %c0_144 = arith.constant 0 : index
    %c0_145 = arith.constant 0 : index
    %264 = vector.load %arg27[%c0_144, %c0_145] : memref<10x32xf32, #tpu.memory_space<vmem>>, vector<5x16xf32>
    tpu.vector_store %arg27[%c0_144, %c0_145], %263 {strides = array<i32>} : memref<10x32xf32, #tpu.memory_space<vmem>>, vector<5x16xf32>,
    %265 = vector.extract_strided_slice %243 {offsets = [0, 16], sizes = [5, 16], strides = [1, 1]} : vector<10x96xf32> to vector<5x16xf32>
    %266 = vector.extract_strided_slice %243 {offsets = [0, 48], sizes = [5, 16], strides = [1, 1]} : vector<10x96xf32> to vector<5x16xf32>
    %267 = vector.extract_strided_slice %243 {offsets = [0, 80], sizes = [5, 16], strides = [1, 1]} : vector<10x96xf32> to vector<5x16xf32>
    %cst_146 = arith.constant dense<0.000000e+00> : vector<5x5xf32>
    %268 = tpu.matmul %265, %266, %cst_146 {dimension_numbers = #tpu.dot_dimension_numbers<[1], [1], [0], [0], [0, 0, 1, 0], [], []>} : vector<5x16xf32>, vector<5x16xf32>, vector<5x5xf32> -> vector<5x5xf32>
    %cst_147 = arith.constant 2.500000e-01 : f32
    %269 = vector.broadcast %cst_147 : f32 to vector<5x5xf32>
    %270 = arith.mulf %268, %269 : vector<5x5xf32>
    %cst_148 = arith.constant dense<0xFF800000> : vector<5xf32>
    %271 = vector.multi_reduction <maximumf>, %270, %cst_148 [1] : vector<5x5xf32> to vector<5xf32>
    %272 = vector.shape_cast %271 : vector<5xf32> to vector<5x1xf32>
    %273 = vector.broadcast %272 : vector<5x1xf32> to vector<5x5xf32>
    %274 = arith.subf %270, %273 : vector<5x5xf32>
    %275 = math.exp %274 : vector<5x5xf32>
    %cst_149 = arith.constant dense<0.000000e+00> : vector<5xf32>
    %276 = vector.multi_reduction <add>, %275, %cst_149 [1] : vector<5x5xf32> to vector<5xf32>
    %277 = vector.shape_cast %276 : vector<5xf32> to vector<5x1xf32>
    %278 = tpu.reciprocal %277 {approx = true} : vector<5x1xf32> -> vector<5x1xf32>
    %279 = vector.broadcast %278 : vector<5x1xf32> to vector<5x5xf32>
    %280 = arith.mulf %275, %279 : vector<5x5xf32>
    %c5_150 = arith.constant 5 : index
    %c0_151 = arith.constant 0 : index
    %c0_152 = arith.constant 0 : index
    %281 = vector.load %arg24[%c5_150, %c0_151, %c0_152] : memref<8x5x5xf32, #tpu.memory_space<vmem>>, vector<1x5x5xf32>
    %282 = vector.shape_cast %281 : vector<1x5x5xf32> to vector<5x5xf32>
    %283 = vector.shape_cast %280 : vector<5x5xf32> to vector<1x5x5xf32>
    tpu.vector_store %arg24[%c5_150, %c0_151, %c0_152], %283 {strides = array<i32>} : memref<8x5x5xf32, #tpu.memory_space<vmem>>, vector<1x5x5xf32>,
    %cst_153 = arith.constant dense<0.000000e+00> : vector<5x16xf32>
    %284 = tpu.matmul %280, %267, %cst_153 {dimension_numbers = #tpu.dot_dimension_numbers<[1], [0], [0], [1], [0, 0, 1, 1], [], []>} : vector<5x5xf32>, vector<5x16xf32>, vector<5x16xf32> -> vector<5x16xf32>
    %c0_154 = arith.constant 0 : index
    %c16_155 = arith.constant 16 : index
    %285 = vector.load %arg27[%c0_154, %c16_155] : memref<10x32xf32, #tpu.memory_space<vmem>>, vector<5x16xf32>
    tpu.vector_store %arg27[%c0_154, %c16_155], %284 {strides = array<i32>} : memref<10x32xf32, #tpu.memory_space<vmem>>, vector<5x16xf32>,
    %286 = vector.extract_strided_slice %243 {offsets = [5, 0], sizes = [5, 16], strides = [1, 1]} : vector<10x96xf32> to vector<5x16xf32>
    %287 = vector.extract_strided_slice %243 {offsets = [5, 32], sizes = [5, 16], strides = [1, 1]} : vector<10x96xf32> to vector<5x16xf32>
    %288 = vector.extract_strided_slice %243 {offsets = [5, 64], sizes = [5, 16], strides = [1, 1]} : vector<10x96xf32> to vector<5x16xf32>
    %cst_156 = arith.constant dense<0.000000e+00> : vector<5x5xf32>
    %289 = tpu.matmul %286, %287, %cst_156 {dimension_numbers = #tpu.dot_dimension_numbers<[1], [1], [0], [0], [0, 0, 1, 0], [], []>} : vector<5x16xf32>, vector<5x16xf32>, vector<5x5xf32> -> vector<5x5xf32>
    %cst_157 = arith.constant 2.500000e-01 : f32
    %290 = vector.broadcast %cst_157 : f32 to vector<5x5xf32>
    %291 = arith.mulf %289, %290 : vector<5x5xf32>
    %cst_158 = arith.constant dense<0xFF800000> : vector<5xf32>
    %292 = vector.multi_reduction <maximumf>, %291, %cst_158 [1] : vector<5x5xf32> to vector<5xf32>
    %293 = vector.shape_cast %292 : vector<5xf32> to vector<5x1xf32>
    %294 = vector.broadcast %293 : vector<5x1xf32> to vector<5x5xf32>
    %295 = arith.subf %291, %294 : vector<5x5xf32>
    %296 = math.exp %295 : vector<5x5xf32>
    %cst_159 = arith.constant dense<0.000000e+00> : vector<5xf32>
    %297 = vector.multi_reduction <add>, %296, %cst_159 [1] : vector<5x5xf32> to vector<5xf32>
    %298 = vector.shape_cast %297 : vector<5xf32> to vector<5x1xf32>
    %299 = tpu.reciprocal %298 {approx = true} : vector<5x1xf32> -> vector<5x1xf32>
    %300 = vector.broadcast %299 : vector<5x1xf32> to vector<5x5xf32>
    %301 = arith.mulf %296, %300 : vector<5x5xf32>
    %c6_160 = arith.constant 6 : index
    %c0_161 = arith.constant 0 : index
    %c0_162 = arith.constant 0 : index
    %302 = vector.load %arg24[%c6_160, %c0_161, %c0_162] : memref<8x5x5xf32, #tpu.memory_space<vmem>>, vector<1x5x5xf32>
    %303 = vector.shape_cast %302 : vector<1x5x5xf32> to vector<5x5xf32>
    %304 = vector.shape_cast %301 : vector<5x5xf32> to vector<1x5x5xf32>
    tpu.vector_store %arg24[%c6_160, %c0_161, %c0_162], %304 {strides = array<i32>} : memref<8x5x5xf32, #tpu.memory_space<vmem>>, vector<1x5x5xf32>,
    %cst_163 = arith.constant dense<0.000000e+00> : vector<5x16xf32>
    %305 = tpu.matmul %301, %288, %cst_163 {dimension_numbers = #tpu.dot_dimension_numbers<[1], [0], [0], [1], [0, 0, 1, 1], [], []>} : vector<5x5xf32>, vector<5x16xf32>, vector<5x16xf32> -> vector<5x16xf32>
    %c5_164 = arith.constant 5 : index
    %c0_165 = arith.constant 0 : index
    %306 = vector.load %arg27[%c5_164, %c0_165] : memref<10x32xf32, #tpu.memory_space<vmem>>, vector<5x16xf32>
    tpu.vector_store %arg27[%c5_164, %c0_165], %305 {strides = array<i32>} : memref<10x32xf32, #tpu.memory_space<vmem>>, vector<5x16xf32>,
    %307 = vector.extract_strided_slice %243 {offsets = [5, 16], sizes = [5, 16], strides = [1, 1]} : vector<10x96xf32> to vector<5x16xf32>
    %308 = vector.extract_strided_slice %243 {offsets = [5, 48], sizes = [5, 16], strides = [1, 1]} : vector<10x96xf32> to vector<5x16xf32>
    %309 = vector.extract_strided_slice %243 {offsets = [5, 80], sizes = [5, 16], strides = [1, 1]} : vector<10x96xf32> to vector<5x16xf32>
    %cst_166 = arith.constant dense<0.000000e+00> : vector<5x5xf32>
    %310 = tpu.matmul %307, %308, %cst_166 {dimension_numbers = #tpu.dot_dimension_numbers<[1], [1], [0], [0], [0, 0, 1, 0], [], []>} : vector<5x16xf32>, vector<5x16xf32>, vector<5x5xf32> -> vector<5x5xf32>
    %cst_167 = arith.constant 2.500000e-01 : f32
    %311 = vector.broadcast %cst_167 : f32 to vector<5x5xf32>
    %312 = arith.mulf %310, %311 : vector<5x5xf32>
    %cst_168 = arith.constant dense<0xFF800000> : vector<5xf32>
    %313 = vector.multi_reduction <maximumf>, %312, %cst_168 [1] : vector<5x5xf32> to vector<5xf32>
    %314 = vector.shape_cast %313 : vector<5xf32> to vector<5x1xf32>
    %315 = vector.broadcast %314 : vector<5x1xf32> to vector<5x5xf32>
    %316 = arith.subf %312, %315 : vector<5x5xf32>
    %317 = math.exp %316 : vector<5x5xf32>
    %cst_169 = arith.constant dense<0.000000e+00> : vector<5xf32>
    %318 = vector.multi_reduction <add>, %317, %cst_169 [1] : vector<5x5xf32> to vector<5xf32>
    %319 = vector.shape_cast %318 : vector<5xf32> to vector<5x1xf32>
    %320 = tpu.reciprocal %319 {approx = true} : vector<5x1xf32> -> vector<5x1xf32>
    %321 = vector.broadcast %320 : vector<5x1xf32> to vector<5x5xf32>
    %322 = arith.mulf %317, %321 : vector<5x5xf32>
    %c7 = arith.constant 7 : index
    %c0_170 = arith.constant 0 : index
    %c0_171 = arith.constant 0 : index
    %323 = vector.load %arg24[%c7, %c0_170, %c0_171] : memref<8x5x5xf32, #tpu.memory_space<vmem>>, vector<1x5x5xf32>
    %324 = vector.shape_cast %323 : vector<1x5x5xf32> to vector<5x5xf32>
    %325 = vector.shape_cast %322 : vector<5x5xf32> to vector<1x5x5xf32>
    tpu.vector_store %arg24[%c7, %c0_170, %c0_171], %325 {strides = array<i32>} : memref<8x5x5xf32, #tpu.memory_space<vmem>>, vector<1x5x5xf32>,
    %cst_172 = arith.constant dense<0.000000e+00> : vector<5x16xf32>
    %326 = tpu.matmul %322, %309, %cst_172 {dimension_numbers = #tpu.dot_dimension_numbers<[1], [0], [0], [1], [0, 0, 1, 1], [], []>} : vector<5x5xf32>, vector<5x16xf32>, vector<5x16xf32> -> vector<5x16xf32>
    %c5_173 = arith.constant 5 : index
    %c16_174 = arith.constant 16 : index
    %327 = vector.load %arg27[%c5_173, %c16_174] : memref<10x32xf32, #tpu.memory_space<vmem>>, vector<5x16xf32>
    tpu.vector_store %arg27[%c5_173, %c16_174], %326 {strides = array<i32>} : memref<10x32xf32, #tpu.memory_space<vmem>>, vector<5x16xf32>,
    %c0_175 = arith.constant 0 : index
    %c0_176 = arith.constant 0 : index
    %328 = vector.load %arg27[%c0_175, %c0_176] : memref<10x32xf32, #tpu.memory_space<vmem>>, vector<10x32xf32>
    %c1_177 = arith.constant 1 : index
    %c0_178 = arith.constant 0 : index
    %c0_179 = arith.constant 0 : index
    %329 = vector.load %arg9[%c1_177, %c0_178, %c0_179] : memref<2x32x32xf32, #tpu.memory_space<vmem>>, vector<1x32x32xf32>
    %330 = vector.shape_cast %329 : vector<1x32x32xf32> to vector<32x32xf32>
    %cst_180 = arith.constant dense<0.000000e+00> : vector<10x32xf32>
    %331 = tpu.matmul %328, %330, %cst_180 {dimension_numbers = #tpu.dot_dimension_numbers<[1], [0], [0], [1], [0, 0, 1, 1], [], []>} : vector<10x32xf32>, vector<32x32xf32>, vector<10x32xf32> -> vector<10x32xf32>
    %c1_181 = arith.constant 1 : index
    %c0_182 = arith.constant 0 : index
    %c0_183 = arith.constant 0 : index
    %332 = vector.load %arg10[%c1_181, %c0_182, %c0_183] : memref<2x1x32xf32, #tpu.memory_space<vmem>>, vector<1x1x32xf32>
    %333 = vector.shape_cast %332 : vector<1x1x32xf32> to vector<1x32xf32>
    %334 = vector.broadcast %333 : vector<1x32xf32> to vector<10x32xf32>
    %335 = arith.addf %331, %334 : vector<10x32xf32>
    %336 = arith.addf %207, %335 : vector<10x32xf32>
    %c1_184 = arith.constant 1 : index
    %c0_185 = arith.constant 0 : index
    %c0_186 = arith.constant 0 : index
    %337 = vector.load %arg11[%c1_184, %c0_185, %c0_186] : memref<2x1x32xf32, #tpu.memory_space<vmem>>, vector<1x1x32xf32>
    %338 = vector.shape_cast %337 : vector<1x1x32xf32> to vector<1x32xf32>
    %c1_187 = arith.constant 1 : index
    %c0_188 = arith.constant 0 : index
    %c0_189 = arith.constant 0 : index
    %339 = vector.load %arg12[%c1_187, %c0_188, %c0_189] : memref<2x1x32xf32, #tpu.memory_space<vmem>>, vector<1x1x32xf32>
    %340 = vector.shape_cast %339 : vector<1x1x32xf32> to vector<1x32xf32>
    %cst_190 = arith.constant dense<0.000000e+00> : vector<10xf32>
    %341 = vector.multi_reduction <add>, %336, %cst_190 [1] : vector<10x32xf32> to vector<10xf32>
    %342 = vector.shape_cast %341 : vector<10xf32> to vector<10x1xf32>
    %cst_191 = arith.constant 3.200000e+01 : f32
    %343 = vector.broadcast %cst_191 : f32 to vector<10x1xf32>
    %344 = arith.divf %342, %343 : vector<10x1xf32>
    %345 = vector.broadcast %344 : vector<10x1xf32> to vector<10x32xf32>
    %346 = arith.subf %336, %345 : vector<10x32xf32>
    %347 = arith.mulf %346, %346 : vector<10x32xf32>
    %cst_192 = arith.constant dense<0.000000e+00> : vector<10xf32>
    %348 = vector.multi_reduction <add>, %347, %cst_192 [1] : vector<10x32xf32> to vector<10xf32>
    %349 = vector.shape_cast %348 : vector<10xf32> to vector<10x1xf32>
    %cst_193 = arith.constant 3.200000e+01 : f32
    %350 = vector.broadcast %cst_193 : f32 to vector<10x1xf32>
    %351 = arith.divf %349, %350 : vector<10x1xf32>
    %352 = vector.broadcast %344 : vector<10x1xf32> to vector<10x32xf32>
    %353 = arith.subf %336, %352 : vector<10x32xf32>
    %cst_194 = arith.constant 9.99999996E-13 : f32
    %354 = vector.broadcast %cst_194 : f32 to vector<10x1xf32>
    %355 = arith.addf %351, %354 : vector<10x1xf32>
    %356 = math.rsqrt %355 : vector<10x1xf32>
    %357 = vector.broadcast %356 : vector<10x1xf32> to vector<10x32xf32>
    %358 = arith.mulf %353, %357 : vector<10x32xf32>
    %359 = vector.broadcast %338 : vector<1x32xf32> to vector<10x32xf32>
    %360 = arith.mulf %358, %359 : vector<10x32xf32>
    %361 = vector.broadcast %340 : vector<1x32xf32> to vector<10x32xf32>
    %362 = arith.addf %360, %361 : vector<10x32xf32>
    %c1_195 = arith.constant 1 : index
    %c0_196 = arith.constant 0 : index
    %c0_197 = arith.constant 0 : index
    %363 = vector.load %arg13[%c1_195, %c0_196, %c0_197] : memref<2x32x64xf32, #tpu.memory_space<vmem>>, vector<1x32x64xf32>
    %364 = vector.shape_cast %363 : vector<1x32x64xf32> to vector<32x64xf32>
    %cst_198 = arith.constant dense<0.000000e+00> : vector<10x64xf32>
    %365 = tpu.matmul %362, %364, %cst_198 {dimension_numbers = #tpu.dot_dimension_numbers<[1], [0], [0], [1], [0, 0, 1, 1], [], []>} : vector<10x32xf32>, vector<32x64xf32>, vector<10x64xf32> -> vector<10x64xf32>
    %c1_199 = arith.constant 1 : index
    %c0_200 = arith.constant 0 : index
    %c0_201 = arith.constant 0 : index
    %366 = vector.load %arg14[%c1_199, %c0_200, %c0_201] : memref<2x1x64xf32, #tpu.memory_space<vmem>>, vector<1x1x64xf32>
    %367 = vector.shape_cast %366 : vector<1x1x64xf32> to vector<1x64xf32>
    %368 = vector.broadcast %367 : vector<1x64xf32> to vector<10x64xf32>
    %369 = arith.addf %365, %368 : vector<10x64xf32>
    %370 = arith.mulf %369, %369 : vector<10x64xf32>
    %371 = arith.mulf %369, %370 : vector<10x64xf32>
    %cst_202 = arith.constant 4.471500e-02 : f32
    %372 = vector.broadcast %cst_202 : f32 to vector<10x64xf32>
    %373 = arith.mulf %372, %371 : vector<10x64xf32>
    %374 = arith.addf %369, %373 : vector<10x64xf32>
    %cst_203 = arith.constant 0.797884583 : f32
    %375 = vector.broadcast %cst_203 : f32 to vector<10x64xf32>
    %376 = arith.mulf %375, %374 : vector<10x64xf32>
    %377 = math.tanh %376 : vector<10x64xf32>
    %cst_204 = arith.constant 1.000000e+00 : f32
    %378 = vector.broadcast %cst_204 : f32 to vector<10x64xf32>
    %379 = arith.addf %378, %377 : vector<10x64xf32>
    %cst_205 = arith.constant 5.000000e-01 : f32
    %380 = vector.broadcast %cst_205 : f32 to vector<10x64xf32>
    %381 = arith.mulf %380, %379 : vector<10x64xf32>
    %382 = arith.mulf %369, %381 : vector<10x64xf32>
    %c1_206 = arith.constant 1 : index
    %c0_207 = arith.constant 0 : index
    %c0_208 = arith.constant 0 : index
    %383 = vector.load %arg15[%c1_206, %c0_207, %c0_208] : memref<2x64x32xf32, #tpu.memory_space<vmem>>, vector<1x64x32xf32>
    %384 = vector.shape_cast %383 : vector<1x64x32xf32> to vector<64x32xf32>
    %cst_209 = arith.constant dense<0.000000e+00> : vector<10x32xf32>
    %385 = tpu.matmul %382, %384, %cst_209 {dimension_numbers = #tpu.dot_dimension_numbers<[1], [0], [0], [1], [0, 0, 1, 1], [], []>} : vector<10x64xf32>, vector<64x32xf32>, vector<10x32xf32> -> vector<10x32xf32>
    %c1_210 = arith.constant 1 : index
    %c0_211 = arith.constant 0 : index
    %c0_212 = arith.constant 0 : index
    %386 = vector.load %arg16[%c1_210, %c0_211, %c0_212] : memref<2x1x32xf32, #tpu.memory_space<vmem>>, vector<1x1x32xf32>
    %387 = vector.shape_cast %386 : vector<1x1x32xf32> to vector<1x32xf32>
    %388 = vector.broadcast %387 : vector<1x32xf32> to vector<10x32xf32>
    %389 = arith.addf %385, %388 : vector<10x32xf32>
    %390 = arith.addf %336, %389 : vector<10x32xf32>
    %c2_213 = arith.constant 2 : index
    %c0_214 = arith.constant 0 : index
    %c0_215 = arith.constant 0 : index
    %391 = vector.load %arg23[%c2_213, %c0_214, %c0_215] : memref<3x10x32xf32, #tpu.memory_space<vmem>>, vector<1x10x32xf32>
    %392 = vector.shape_cast %391 : vector<1x10x32xf32> to vector<10x32xf32>
    %393 = vector.shape_cast %390 : vector<10x32xf32> to vector<1x10x32xf32>
    tpu.vector_store %arg23[%c2_213, %c0_214, %c0_215], %393 {strides = array<i32>} : memref<3x10x32xf32, #tpu.memory_space<vmem>>, vector<1x10x32xf32>,
    %c0_216 = arith.constant 0 : index
    %c0_217 = arith.constant 0 : index
    %394 = vector.load %arg17[%c0_216, %c0_217] : memref<1x32xf32, #tpu.memory_space<vmem>>, vector<1x32xf32>
    %c0_218 = arith.constant 0 : index
    %c0_219 = arith.constant 0 : index
    %395 = vector.load %arg18[%c0_218, %c0_219] : memref<1x32xf32, #tpu.memory_space<vmem>>, vector<1x32xf32>
    %cst_220 = arith.constant dense<0.000000e+00> : vector<10xf32>
    %396 = vector.multi_reduction <add>, %390, %cst_220 [1] : vector<10x32xf32> to vector<10xf32>
    %397 = vector.shape_cast %396 : vector<10xf32> to vector<10x1xf32>
    %cst_221 = arith.constant 3.200000e+01 : f32
    %398 = vector.broadcast %cst_221 : f32 to vector<10x1xf32>
    %399 = arith.divf %397, %398 : vector<10x1xf32>
    %400 = vector.broadcast %399 : vector<10x1xf32> to vector<10x32xf32>
    %401 = arith.subf %390, %400 : vector<10x32xf32>
    %402 = arith.mulf %401, %401 : vector<10x32xf32>
    %cst_222 = arith.constant dense<0.000000e+00> : vector<10xf32>
    %403 = vector.multi_reduction <add>, %402, %cst_222 [1] : vector<10x32xf32> to vector<10xf32>
    %404 = vector.shape_cast %403 : vector<10xf32> to vector<10x1xf32>
    %cst_223 = arith.constant 3.200000e+01 : f32
    %405 = vector.broadcast %cst_223 : f32 to vector<10x1xf32>
    %406 = arith.divf %404, %405 : vector<10x1xf32>
    %407 = vector.broadcast %399 : vector<10x1xf32> to vector<10x32xf32>
    %408 = arith.subf %390, %407 : vector<10x32xf32>
    %cst_224 = arith.constant 9.99999996E-13 : f32
    %409 = vector.broadcast %cst_224 : f32 to vector<10x1xf32>
    %410 = arith.addf %406, %409 : vector<10x1xf32>
    %411 = math.rsqrt %410 : vector<10x1xf32>
    %412 = vector.broadcast %411 : vector<10x1xf32> to vector<10x32xf32>
    %413 = arith.mulf %408, %412 : vector<10x32xf32>
    %414 = vector.broadcast %394 : vector<1x32xf32> to vector<10x32xf32>
    %415 = arith.mulf %413, %414 : vector<10x32xf32>
    %416 = vector.broadcast %395 : vector<1x32xf32> to vector<10x32xf32>
    %417 = arith.addf %415, %416 : vector<10x32xf32>
    %418 = vector.extract_strided_slice %417 {offsets = [0, 0], sizes = [1, 32], strides = [1, 1]} : vector<10x32xf32> to vector<1x32xf32>
    %c0_225 = arith.constant 0 : index
    %c0_226 = arith.constant 0 : index
    %419 = vector.load %arg25[%c0_225, %c0_226] : memref<2x32xf32, #tpu.memory_space<vmem>>, vector<1x32xf32>
    tpu.vector_store %arg25[%c0_225, %c0_226], %418 {strides = array<i32>} : memref<2x32xf32, #tpu.memory_space<vmem>>, vector<1x32xf32>,
    %420 = vector.extract_strided_slice %417 {offsets = [5, 0], sizes = [1, 32], strides = [1, 1]} : vector<10x32xf32> to vector<1x32xf32>
    %c1_227 = arith.constant 1 : index
    %c0_228 = arith.constant 0 : index
    %421 = vector.load %arg25[%c1_227, %c0_228] : memref<2x32xf32, #tpu.memory_space<vmem>>, vector<1x32xf32>
    tpu.vector_store %arg25[%c1_227, %c0_228], %420 {strides = array<i32>} : memref<2x32xf32, #tpu.memory_space<vmem>>, vector<1x32xf32>,
    %c0_229 = arith.constant 0 : index
    %c0_230 = arith.constant 0 : index
    %422 = vector.load %arg25[%c0_229, %c0_230] : memref<2x32xf32, #tpu.memory_space<vmem>>, vector<2x32xf32>
    %c0_231 = arith.constant 0 : index
    %c0_232 = arith.constant 0 : index
    %423 = vector.load %arg19[%c0_231, %c0_232] : memref<32x256xf32, #tpu.memory_space<vmem>>, vector<32x256xf32>
    %cst_233 = arith.constant dense<0.000000e+00> : vector<2x256xf32>
    %424 = tpu.matmul %422, %423, %cst_233 {dimension_numbers = #tpu.dot_dimension_numbers<[1], [0], [0], [1], [0, 0, 1, 1], [], []>} : vector<2x32xf32>, vector<32x256xf32>, vector<2x256xf32> -> vector<2x256xf32>
    %c0_234 = arith.constant 0 : index
    %c0_235 = arith.constant 0 : index
    %425 = vector.load %arg20[%c0_234, %c0_235] : memref<1x256xf32, #tpu.memory_space<vmem>>, vector<1x256xf32>
    %426 = vector.broadcast %425 : vector<1x256xf32> to vector<2x256xf32>
    %427 = arith.addf %424, %426 : vector<2x256xf32>
    %cst_236 = arith.constant 0.000000e+00 : f32
    %428 = vector.broadcast %cst_236 : f32 to vector<2x256xf32>
    %429 = arith.maximumf %427, %428 : vector<2x256xf32>
    %c0_237 = arith.constant 0 : index
    %c0_238 = arith.constant 0 : index
    %430 = vector.load %arg21[%c0_237, %c0_238] : memref<256x2xf32, #tpu.memory_space<vmem>>, vector<256x2xf32>
    %cst_239 = arith.constant dense<0.000000e+00> : vector<2x2xf32>
    %431 = tpu.matmul %429, %430, %cst_239 {dimension_numbers = #tpu.dot_dimension_numbers<[1], [0], [0], [1], [0, 0, 1, 1], [], []>} : vector<2x256xf32>, vector<256x2xf32>, vector<2x2xf32> -> vector<2x2xf32>
    %c0_240 = arith.constant 0 : index
    %c0_241 = arith.constant 0 : index
    %432 = vector.load %arg22[%c0_240, %c0_241] : memref<1x2xf32, #tpu.memory_space<vmem>>, vector<1x2xf32>
    %433 = vector.broadcast %432 : vector<1x2xf32> to vector<2x2xf32>
    %434 = arith.addf %431, %433 : vector<2x2xf32>
    %c0_242 = arith.constant 0 : index
    %c0_243 = arith.constant 0 : index
    %435 = vector.load %arg26[%c0_242, %c0_243] : memref<2x2xf32, #tpu.memory_space<vmem>>, vector<2x2xf32>
    tpu.vector_store %arg26[%c0_242, %c0_243], %434 {strides = array<i32>} : memref<2x2xf32, #tpu.memory_space<vmem>>, vector<2x2xf32>,
    return
  }
}

</mosaic_0001>

<bundles_post_ra>
// kernel: squeeze.5
= control target key start
LH: loop header
LB: loop body
LE: loop exit
PB: predicated region body
PF: predicated region fallthrough
CT: control target
= control target key end

     0   :  { %vm3_vm0 = vcmask 261120   ;;  %s40_s0 = inlined_call_operand.vmem [shape: f32[1,10,32], index: 0, kind: input, shape index: {}]   ;;  %s41_s1 = inlined_call_operand.vmem [shape: f32[2,5,32], index: 1, kind: output, shape index: {}]  }
   0x1   :  { %v2_v0 = vld [vmem:[%s40_s0] sm:$0xff]   ;;  %v13_v1 = vld [vmem:[%s40_s0 + $0x8] sm:$0x3]  }
   0x2   :  { %4 = vst.msk [vmem:[%s41_s1] sm:$0x1f] %vm3_vm0, %v2_v0   ;;  %12 = vst.msk [vmem:[%s41_s1 + $0x3] sm:$0xe0] %vm3_vm0, %v2_v0  }
   0x3   :  { %14 = vst.msk [vmem:[%s41_s1 + $0xb] sm:$0x3] %vm3_vm0, %v13_v1  }

// kernel: mnist_vit_forward.1
= control target key start
LH: loop header
LB: loop body
LE: loop exit
PB: predicated region body
PF: predicated region fallthrough
CT: control target
= control target key end

     0   :  { %s4418_s0 = inlined_call_operand.vmem [shape: f32[8,192], index: 0, kind: input, shape index: {}]   ;;  %s4419_s1 = inlined_call_operand.vmem [shape: f32[192,32], index: 1, kind: input, shape index: {}]   ;;  %s4420_s2 = inlined_call_operand.vmem [shape: f32[1,32], index: 2, kind: input, shape index: {}]   ;;  %s4421_s3 = inlined_call_operand.vmem [shape: f32[1,32], index: 3, kind: input, shape index: {}]   ;;  %s4422_s4 = inlined_call_operand.vmem [shape: f32[5,32], index: 4, kind: input, shape index: {}]   ;;  %s4423_s5 = inlined_call_operand.vmem [shape: f32[2,1,32], index: 5, kind: input, shape index: {}]   ;;  %s4424_s6 = inlined_call_operand.vmem [shape: f32[2,1,32], index: 6, kind: input, shape index: {}]   ;;  %s4425_s7 = inlined_call_operand.vmem [shape: f32[2,32,96], index: 7, kind: input, shape index: {}]   ;;  %s4426_s8 = inlined_call_operand.vmem [shape: f32[2,1,96], index: 8, kind: input, shape index: {}]   ;;  %s4427_s9 = inlined_call_operand.vmem [shape: f32[2,32,32], index: 9, kind: input, shape index: {}]   ;;  %s4428_s10 = inlined_call_operand.vmem [shape: f32[2,1,32], index: 10, kind: input, shape index: {}]   ;;  %s4429_s11 = inlined_call_operand.vmem [shape: f32[2,1,32], index: 11, kind: input, shape index: {}]   ;;  %s4430_s12 = inlined_call_operand.vmem [shape: f32[2,1,32], index: 12, kind: input, shape index: {}]   ;;  %s4431_s13 = inlined_call_operand.vmem [shape: f32[2,32,64], index: 13, kind: input, shape index: {}]   ;;  %s4432_s14 = inlined_call_operand.vmem [shape: f32[2,1,64], index: 14, kind: input, shape index: {}]   ;;  %s4433_s15 = inlined_call_operand.vmem [shape: f32[2,64,32], index: 15, kind: input, shape index: {}]   ;;  %s4434_s16 = inlined_call_operand.vmem [shape: f32[2,1,32], index: 16, kind: input, shape index: {}]   ;;  %s4435_s17 = inlined_call_operand.vmem [shape: f32[1,32], index: 17, kind: input, shape index: {}]   ;;  %s4436_s18 = inlined_call_operand.vmem [shape: f32[1,32], index: 18, kind: input, shape index: {}]   ;;  %s4437_s19 = inlined_call_operand.vmem [shape: f32[32,256], index: 19, kind: input, shape index: {}]   ;;  %s4438_s20 = inlined_call_operand.vmem [shape: f32[1,256], index: 20, kind: input, shape index: {}]   ;;  %s4439_s21 = inlined_call_operand.vmem [shape: f32[256,2], index: 21, kind: input, shape index: {}]   ;;  %s4440_s22 = inlined_call_operand.vmem [shape: f32[1,2], index: 22, kind: input, shape index: {}]   ;;  %s4441_s23 = inlined_call_operand.vmem [shape: f32[3,10,32], index: 23, kind: output, shape index: {0}]   ;;  %s4442_s24 = inlined_call_operand.vmem [shape: f32[8,5,5], index: 24, kind: output, shape index: {1}]   ;;  %s4443_s25 = inlined_call_operand.hbm [shape: f32[2,32], index: 25, kind: output, shape index: {2}]   ;;  %s4444_s26 = inlined_call_operand.hbm [shape: f32[2,2], index: 26, kind: output, shape index: {3}]  }
   0x1   :  { %4466 = sst [smem:[#allocation9_spill]] %s4418_s0 }
   0x2   :  { %4467 = sst [smem:[#allocation10_spill]] %s4419_s1 }
   0x3   :  { %4468 = sst [smem:[#allocation11_spill]] %s4420_s2 }
   0x4   :  { %4469 = sst [smem:[#allocation12_spill]] %s4421_s3 }
   0x5   :  { %4470 = sst [smem:[#allocation13_spill]] %s4422_s4 }
   0x6   :  { %4471 = sst [smem:[#allocation14_spill]] %s4423_s5 }
   0x7   :  { %4472 = sst [smem:[#allocation15_spill]] %s4424_s6 }
   0x8   :  { %4473 = sst [smem:[#allocation16_spill]] %s4425_s7 }
   0x9   :  { %4474 = sst [smem:[#allocation17_spill]] %s4426_s8 }
   0xa   :  { %4475 = sst [smem:[#allocation18_spill]] %s4427_s9 }
   0xb   :  { %4476 = sst [smem:[#allocation19_spill]] %s4428_s10 }
   0xc   :  { %32 = vsyncpa [#allocation4], 0  ;;  %s4477_s7 = sld [smem:[#allocation10_spill]]  ;;  %v3543_v3 = vmov 0.0|0.0   ;;  %vm113_vm0 = vcmask 523264   ;;  %s4478_s4 = sld [smem:[#allocation9_spill]] }
   0xd   :  { %3270 = vmatprep.subr.bf16.mxu0 %v3543_v3 }
  0x12   :  { %v82_v0 = vld [vmem:[%s4477_s7] sm:$0xff]  ;;  %v83_v1 = vld [vmem:[%s4477_s7 + $0x8] sm:$0xff]  ;;  %v84_v2 = vld [vmem:[%s4477_s7 + $0x10] sm:$0xff] }
  0x13   :  { %v3271_v4 = vpack.c.bf16 %v83_v1, %v82_v0  ;;  %v85_v5 = vld [vmem:[%s4477_s7 + $0x18] sm:$0xff]  ;;  %v86_v7 = vld [vmem:[%s4477_s7 + $0x20] sm:$0xff]  ;;  %v87_v8 = vld [vmem:[%s4477_s7 + $0x28] sm:$0xff] }
  0x14   :  { %v3274_v6 = vpack.c.bf16 %v85_v5, %v84_v2  ;;  %v3277_v9 = vpack.c.bf16 %v87_v8, %v86_v7  ;;  %v88_v10 = vld [vmem:[%s4477_s7 + $0x30] sm:$0xff]  ;;  %v89_v11 = vld [vmem:[%s4477_s7 + $0x38] sm:$0xff]  ;;  %v81_v12 = vld [vmem:[%s4478_s4 + $0x8] sm:$0xff] }
  0x15   :  { %3272 = vmatpush1.bf16.msra.mxu0 %v3271_v4  ;;  %2855 = vmatprep.mubr.msk.f32.mxu0 %vm113_vm0, %v81_v12 }
  0x16   :  { %3273 = vmatprep.subr.bf16.mxu0 %v3543_v3 }
  0x19   :  { %3275 = vmatpush1.bf16.msra.mxu0 %v3274_v6 }
  0x1a   :  { %3276 = vmatprep.subr.bf16.mxu0 %v3543_v3 }
  0x1b   :  { %33 = vsyncpa [#allocation6], 0  ;;  %v3280_v13 = vpack.c.bf16 %v89_v11, %v88_v10  ;;  %v90_v14 = vld [vmem:[%s4477_s7 + $0x40] sm:$0xff]  ;;  %v91_v15 = vld [vmem:[%s4477_s7 + $0x48] sm:$0xff]  ;;  %s4479_s3 = sld [smem:[#allocation12_spill]]  ;;  %s4480_s29 = sld [smem:[#allocation13_spill]] }
  0x1c   :  { %v3283_v16 = vpack.c.bf16 %v91_v15, %v90_v14  ;;  %v92_v17 = vld [vmem:[%s4477_s7 + $0x50] sm:$0xff]  ;;  %v93_v18 = vld [vmem:[%s4477_s7 + $0x58] sm:$0xff]  ;;  %v94_v20 = vld [vmem:[%s4477_s7 + $0x60] sm:$0xff]  ;;  %vm191_vm1 = vcmask 253952   ;;  %s4481_s6 = sld [smem:[#allocation11_spill]]  ;;  %vm194_vm2 = vcmask 257024  }
  0x1d   :  { %3278 = vmatpush1.bf16.msra.mxu0 %v3277_v9  ;;  %v3286_v19 = vpack.c.bf16 %v93_v18, %v92_v17  ;;  %v95_v21 = vld [vmem:[%s4477_s7 + $0x68] sm:$0xff]  ;;  %v96_v23 = vld [vmem:[%s4477_s7 + $0x70] sm:$0xff]  ;;  %v97_v24 = vld [vmem:[%s4477_s7 + $0x78] sm:$0xff]  ;;  %vm201_vm3 = vcmask 261124   ;;  %vm207_vm4 = vcmask 261120   ;;  %vm211_vm5 = vcmask 254976  }
  0x1e   :  { %3279 = vmatprep.subr.bf16.mxu0 %v3543_v3  ;;  %v3289_v22 = vpack.c.bf16 %v95_v21, %v94_v20  ;;  %v3292_v25 = vpack.c.bf16 %v97_v24, %v96_v23  ;;  %v98_v26 = vld [vmem:[%s4477_s7 + $0x80] sm:$0xff]  ;;  %v99_v27 = vld [vmem:[%s4477_s7 + $0x88] sm:$0xff]  ;;  %v100_v29 = vld [vmem:[%s4477_s7 + $0x90] sm:$0xff]  ;;  %s4483_s8 = sld [smem:[#allocation14_spill]]  ;;  %s4484_s0 = sld [smem:[#allocation15_spill]]  ;;  %vm3545_vm6 = vmmov 0  }
  0x1f   :  { %v3295_v28 = vpack.c.bf16 %v99_v27, %v98_v26  ;;  %v101_v30 = vld [vmem:[%s4477_s7 + $0x98] sm:$0xff]  ;;  %v102_v32 = vld [vmem:[%s4477_s7 + $0xa0] sm:$0xff]  ;;  %v103_v33 = vld [vmem:[%s4477_s7 + $0xa8] sm:$0xff]  ;;  %s4485_s2 = sld [smem:[#allocation17_spill]]  ;;  %s4460_s5 = smov 96   ;;  %vm347_vm7 = vcmask 130048  }
  0x20   :  { %v3298_v31 = vpack.c.bf16 %v101_v30, %v100_v29  ;;  %v3301_v34 = vpack.c.bf16 %v103_v33, %v102_v32  ;;  %v104_v35 = vld [vmem:[%s4477_s7 + $0xb0] sm:$0xff]  ;;  %v105_v36 = vld [vmem:[%s4477_s7 + $0xb8] sm:$0xff]  ;;  %v80_v38 = vld [vmem:[%s4478_s4] sm:$0xff]  ;;  %s4482_s4 = sld [smem:[#allocation16_spill]]  ;;  %s4462_s10 = smov 80   ;;  %vm423_vm8 = vcmask 36864  }
  0x21   :  { %3281 = vmatpush1.bf16.msra.mxu0 %v3280_v13  ;;  %v3304_v37 = vpack.c.bf16 %v105_v36, %v104_v35  ;;  %v187_v39 = vld [vmem:[%s4479_s3] sm:$0x1]  ;;  %v190_v42 = vld [vmem:[%s4480_s29 + $0x1] sm:$0xf]  ;;  %vm442_vm9 = vcmask 1044480   ;;  %s4458_s1 = smov 112  }
  0x22   :  { %3282 = vmatprep.subr.bf16.mxu0 %v3543_v3  ;;  %v188_v40 = vld [vmem:[%s4480_s29] sm:$0x1]  ;;  %v198_v44 = vrot.slane %v190_v42, 4  ;;  %vm438_vm10 = vcmask 39936   ;;  %vm515_vm11 = vcmask 126976   ;;  %s4456_s28 = smov 48  }
  0x23   :  { %v189_v41 = vadd.f32 %v188_v40, %v187_v39  ;;  %v2854_v43 = vld [vmem:[%s4481_s6] ss:$0 sm:$0xff]  ;;  %s4454_s6 = smov 64   ;;  %vm693_vm12 = vcmask 1042432   ;;  %s4464_s27 = smov 16   ;;  %vm690_vm13 = vcmask 258176  }
  0x24   :  { %v2856_v13 = vld [vmem:[%s4483_s8] ss:$0 sm:$0xff]  ;;  %s4486_s30 = sld [smem:[#allocation18_spill]]  ;;  %s4487_s3 = smov 16   ;;  %vm2608_vm14 = vcmask 259077  }
  0x25   :  { %3284 = vmatpush1.bf16.msra.mxu0 %v3283_v16  ;;  %192 = vst.msk [vmem:[%s4441_s23] sm:$0x1] %vm191_vm1, %v189_v41  ;;  %196 = vst.msk [vmem:[%s4441_s23 + $0x5] sm:$0x1] %vm191_vm1, %v189_v41  ;;  %v2857_v15 = vld [vmem:[%s4484_s0] ss:$0 sm:$0xff] }
  0x26   :  { %3285 = vmatprep.subr.bf16.mxu0 %v3543_v3  ;;  %v252_v0 = vld [vmem:[%s4482_s4] sm:$0xff]  ;;  %v253_v1 = vld [vmem:[%s4482_s4 + $0x8] sm:$0xff]  ;;  %v255_v4 = vld [vmem:[%s4482_s4 + $0x18] sm:$0xff] }
  0x27   :  { %v3306_v2 = vpack.c.bf16 %v253_v1, %v252_v0  ;;  %v2858_v23 = vld [vmem:[%s4485_s2] ss:$0 sm:$0xff] }
  0x29   :  { %3287 = vmatpush1.bf16.msra.mxu0 %v3286_v19 }
  0x2a   :  { %3288 = vmatprep.subr.bf16.mxu0 %v3543_v3 }
  0x2d   :  { %3290 = vmatpush1.bf16.msra.mxu0 %v3289_v22  ;;  %v3544_v22 = vmov 0.0  }
  0x2e   :  { %3291 = vmatprep.subr.bf16.mxu0 %v3543_v3  ;;  %3102 = vmatprep.subr.mxu1 %v3544_v22 }
  0x2f   :  { %3104 = vmatprep.mubr.msk.f32.mxu1 %vm3545_vm6, %v3544_v22 }
  0x31   :  { %3293 = vmatpush1.bf16.msra.mxu0 %v3292_v25 }
  0x32   :  { %3294 = vmatprep.subr.bf16.mxu0 %v3543_v3 }
  0x35   :  { %3296 = vmatpush1.bf16.msra.mxu0 %v3295_v28 }
  0x36   :  { %3297 = vmatprep.subr.bf16.mxu0 %v3543_v3 }
  0x39   :  { %3299 = vmatpush1.bf16.msra.mxu0 %v3298_v31 }
  0x3a   :  { %3300 = vmatprep.subr.bf16.mxu0 %v3543_v3 }
  0x3d   :  { %3302 = vmatpush1.bf16.msra.mxu0 %v3301_v34 }
  0x3e   :  { %3303 = vmatprep.subr.bf16.mxu0 %v3543_v3  ;;  %v254_v3 = vld [vmem:[%s4482_s4 + $0x10] sm:$0xff] }
  0x3f   :  { %v3310_v5 = vpack.c.bf16 %v255_v4, %v254_v3 }
  0x41   :  { %3305 = vmatpush1.bf16.msra.mxu0 %v3304_v37 }
  0x42   :  { %3307 = vmatprep.subr.bf16.mxu0 %v3306_v2 }
  0x44   :  { %182 = vmatmul.mubr.f32.vlgmr.msra.gmra.mrb[0].mxu0 %v80_v38 }
  0x45   :  { %3309 = vmatpush3.bf16.msra.mxu0 %v3306_v2 }
  0x46   :  { %3311 = vmatprep.subr.bf16.mxu0 %v3310_v5 }
  0x49   :  { %3313 = vmatpush3.bf16.msra.mxu0 %v3310_v5 }
  0x4a   :  { %3097 = vmatprep.subr.mxu0 %v3544_v22 }
 0x117   :  { %v183_v45 = vpop.f32.mrb[0].mxu0 }
 0x118   :  { %v184_v46 = vadd.f32 %v2854_v43, %v183_v45  ;;  %v185_v47 = vpop.f32.mrb[1].mxu0 }
 0x11a   :  { %v193_v48 = vadd.f32 %v190_v42, %v184_v46  ;;  %v200_v49 = vadd.f32 %v198_v44, %v184_v46 }
 0x11c   :  { %195 = vst.msk [vmem:[%s4441_s23 + $0x1] sm:$0xf] %vm194_vm2, %v193_v48 }
 0x11d   :  { %202 = vst.msk [vmem:[%s4441_s23 + $0x2] sm:$0xf0] %vm201_vm3, %v200_v49 }
 0x124   :  { %v3797_v50 = vld [vmem:[%s4441_s23] sm:$0xff]  ;;  %v3804_v52 = vld [vmem:[%s4441_s23 + $0x8] sm:$0x3] }
 0x125   :  { %v208_v51 = vsel %vm207_vm4, %v3797_v50, 0.0  ;;  %v212_v53 = vsel %vm211_vm5, %v3804_v52, 0.0 }
 0x126   :  { %209 = vadd.xlane.f32.xlu0 %v208_v51 }
 0x12a   :  { %213 = vadd.xlane.f32.xlu0 %v212_v53 }
 0x1b3   :  { %v210_v54 = vpop.xlane.xlu0 %209 }
 0x1b4   :  { %v216_v55 = vmul.f32 0.03125, %v210_v54 }
 0x1b6   :  { %v218_v56 = vsub.f32 %v3797_v50, %v216_v55 }
 0x1b7   :  { %v214_v57 = vpop.xlane.xlu0 %213 }
 0x1b8   :  { %v217_v58 = vmul.f32 0.03125, %v214_v57  ;;  %v220_v59 = vmul.f32 %v218_v56, %v218_v56 }
 0x1ba   :  { %v219_v60 = vsub.f32 %v3804_v52, %v217_v58  ;;  %v222_v61 = vsel %vm207_vm4, %v220_v59, 0.0 }
 0x1bb   :  { %223 = vadd.xlane.f32.xlu1 %v222_v61 }
 0x1bc   :  { %v221_v62 = vmul.f32 %v219_v60, %v219_v60 }
 0x1be   :  { %v225_v63 = vsel %vm211_vm5, %v221_v62, 0.0 }
 0x1bf   :  { %226 = vadd.xlane.f32.xlu1 %v225_v63 }
 0x248   :  { %v224_v6 = vpop.xlane.xlu1 %223 }
 0x249   :  { %v228_v7 = vmul.f32 0.03125, %v224_v6 }
 0x24b   :  { %v230_v8 = vadd.f32 1e-12, %v228_v7 }
 0x24c   :  { %v227_v9 = vpop.xlane.xlu1 %226 }
 0x24d   :  { %3437 = vrsqrt.f32 %v230_v8  ;;  %v229_v10 = vmul.f32 0.03125, %v227_v9 }
 0x24f   :  { %v231_v11 = vadd.f32 1e-12, %v229_v10 }
 0x251   :  { %3439 = vrsqrt.f32 %v231_v11 }
 0x257   :  { %v3438_v12 = vpop.eup %3437 }
 0x258   :  { %v234_v14 = vmul.f32 %v3438_v12, %v218_v56 }
 0x25a   :  { %v242_v16 = vmul.f32 %v2856_v13, %v234_v14 }
 0x25b   :  { %v3440_v17 = vpop.eup %3439 }
 0x25c   :  { %v235_v18 = vmul.f32 %v3440_v17, %v219_v60  ;;  %v250_v19 = vadd.f32 %v2857_v15, %v242_v16 }
 0x25e   :  { %v243_v20 = vmul.f32 %v2856_v13, %v235_v18  ;;  %3094 = vmatprep.mubr.msk.f32.mxu0 %vm207_vm4, %v250_v19 }
 0x260   :  { %v251_v21 = vadd.f32 %v2857_v15, %v243_v20 }
 0x262   :  { %3095 = vmatmul.mubr.msk.f32.vlgmr.msra.gmra.mrb[2].mxu0 %vm207_vm4, %v251_v21 }
 0x263   :  { %3099 = vmatprep.mubr.msk.f32.mxu0 %vm3545_vm6, %v3544_v22 }
 0x335   :  { %v3096_v24 = vpop.f32.mrb[2].mxu0 }
 0x336   :  { %v3841_v25 = vadd.f32 %v3096_v24, %v2858_v23  ;;  %v335_v26 = vpop.f32.mrb[3].mxu0 }
 0x337   :  { %v3843_v27 = vadd.f32 %v2858_v23, %v335_v26 }
 0x338   :  { %v695_v58 = vrot.slane %v3841_v25, 5 }
 0x339   :  { %345 = vrot.lane.b32.xlu0 %v3843_v27, %s4460_s5  ;;  %v694_v59 = vrot.slane %v3843_v27, 5 }
 0x33b   :  { %v3882_v60 = vsel %vm693_vm12, %v694_v59, %v695_v58 }
 0x33d   :  { %519 = vrot.lane.b32.xlu0 %v3843_v27, %s4462_s10 }
 0x3ab   :  { %v346_v28 = vpop.permute.xlu0 %345 }
 0x3ac   :  { %3098 = vmatpush3.xpose.msk.msra.mxu0 %vm347_vm7, %v346_v28 }
 0x3af   :  { %3100 = vmatmul.mubr.msk.f32.vlgmr.msra.gmra.mrb[4].mxu0 %vm347_vm7, %v3843_v27  ;;  %v520_v42 = vpop.permute.xlu0 %519 }
 0x482   :  { %v418_v29 = vpop.f32.mrb[4].mxu0 }
 0x483   :  { %v422_v30 = vmul.f32 0.25, %v418_v29  ;;  %v3101_v31 = vpop.f32.mrb[5].mxu0 }
 0x485   :  { %v424_v32 = vsel %vm423_vm8, %v422_v30, -inf }
 0x486   :  { %425 = vmax.xlane.f32.xlu1 %v424_v32 }
 0x497   :  { %436 = vrot.lane.b32.xlu1 %v3843_v27, %s4454_s6 }
 0x513   :  { %v426_v33 = vpop.xlane.xlu1 %425 }
 0x514   :  { %v427_v34 = vsub.f32 %v422_v30, %v426_v33 }
 0x516   :  { %v428_v35 = vmul.f32 1.442695, %v427_v34 }
 0x517   :  { %v437_v36 = vpop.permute.xlu1 %436 }
 0x518   :  { %3441 = vpow2.f32 %v428_v35  ;;  %3103 = vmatpush3.msk.msra.mxu1 %vm442_vm9, %v437_v36  ;;  %v1041_v35 = vld [vmem:[%s4486_s30] sm:$0xff]  ;;  %v1042_v36 = vld [vmem:[%s4486_s30 + $0x8] sm:$0xff] }
 0x519   :  { %3107 = vmatprep.subr.mxu1 %v3544_v22 }
 0x522   :  { %v3442_v37 = vpop.eup %3441 }
 0x523   :  { %v430_v38 = vsel %vm423_vm8, %v3442_v37, 0.0 }
 0x524   :  { %431 = vadd.xlane.f32.xlu1 %v430_v38  ;;  %v1043_v38 = vld [vmem:[%s4486_s30 + $0x10] sm:$0xff] }
 0x535   :  { %517 = vrot.lane.b32.xlu1 %v3843_v27, %s4458_s1 }
 0x5b1   :  { %v432_v39 = vpop.xlane.xlu1 %431 }
 0x5b2   :  { %3443 = vrcp.f32 %v432_v39  ;;  %v1044_v39 = vld [vmem:[%s4486_s30 + $0x18] sm:$0xff] }
 0x5b5   :  { %v518_v43 = vpop.permute.xlu1 %517 }
 0x5bc   :  { %v3444_v40 = vpop.eup %3443 }
 0x5bd   :  { %v434_v41 = vmul.f32 %v3444_v40, %v3442_v37  ;;  %v3314_v37 = vpack.c.bf16 %v1042_v36, %v1041_v35  ;;  %v3318_v40 = vpack.c.bf16 %v1044_v39, %v1043_v38  ;;  %v2885_v36 = vld [vmem:[%s4432_s14] ss:$0 sm:$0xff] }
 0x5bf   :  { %435 = vst.msk [vmem:[%s4442_s24] sm:$0x1f] %vm423_vm8, %v434_v41  ;;  %3105 = vmatmul.mubr.msk.f32.vlgmr.msra.gmra.mrb[0].mxu1 %vm438_vm10, %v434_v41 }
 0x5c0   :  { %3108 = vmatpush3.xpose.msk.msra.mxu1 %vm347_vm7, %v520_v42  ;;  %3109 = vmatprep.mubr.msk.f32.mxu1 %vm3545_vm6, %v3544_v22 }
 0x5c1   :  { %3112 = vmatprep.subr.mxu1 %v3544_v22 }
 0x5c3   :  { %3110 = vmatmul.mubr.msk.f32.vlgmr.msra.gmra.mrb[2].mxu1 %vm347_vm7, %v518_v43 }
 0x5c4   :  { %3114 = vmatprep.mubr.msk.f32.mxu1 %vm3545_vm6, %v3544_v22 }
 0x692   :  { %v511_v44 = vpop.f32.mrb[0].mxu1 }
 0x693   :  { %516 = vst.msk [vmem:[#allocation2] sm:$0x1f] %vm515_vm11, %v511_v44  ;;  %v3106_v45 = vpop.f32.mrb[1].mxu1 }
 0x696   :  { %v591_v46 = vpop.f32.mrb[2].mxu1 }
 0x697   :  { %v595_v47 = vmul.f32 0.25, %v591_v46  ;;  %v3111_v48 = vpop.f32.mrb[3].mxu1 }
 0x699   :  { %v596_v49 = vsel %vm423_vm8, %v595_v47, -inf }
 0x69a   :  { %597 = vmax.xlane.f32.xlu0 %v596_v49 }
 0x6b0   :  { %609 = vrot.lane.b32.xlu0 %v3843_v27, %s4456_s28 }
 0x727   :  { %v598_v51 = vpop.xlane.xlu0 %597 }
 0x728   :  { %v599_v53 = vsub.f32 %v595_v47, %v598_v51 }
 0x72a   :  { %v600_v54 = vmul.f32 1.442695, %v599_v53 }
 0x72b   :  { %v610_v55 = vpop.permute.xlu0 %609 }
 0x72c   :  { %3445 = vpow2.f32 %v600_v54  ;;  %3113 = vmatpush3.msk.msra.mxu1 %vm442_vm9, %v610_v55 }
 0x72d   :  { %3117 = vmatprep.subr.mxu1 %v3544_v22 }
 0x736   :  { %v3446_v56 = vpop.eup %3445 }
 0x737   :  { %v602_v57 = vsel %vm423_vm8, %v3446_v56, 0.0 }
 0x738   :  { %603 = vadd.xlane.f32.xlu1 %v602_v57 }
 0x749   :  { %697 = vrot.lane.b32.xlu1 %v3882_v60, %s4460_s5 }
 0x7c5   :  { %v604_v61 = vpop.xlane.xlu1 %603 }
 0x7c6   :  { %3447 = vrcp.f32 %v604_v61 }
 0x7c9   :  { %v698_v0 = vpop.permute.xlu1 %697 }
 0x7d0   :  { %v3448_v62 = vpop.eup %3447 }
 0x7d1   :  { %v606_v63 = vmul.f32 %v3448_v62, %v3446_v56 }
 0x7d3   :  { %2867 = vst.msk [vmem:[%s4442_s24 + $0x8] sm:$0x1f] %vm423_vm8, %v606_v63  ;;  %3115 = vmatmul.mubr.msk.f32.vlgmr.msra.gmra.mrb[4].mxu1 %vm438_vm10, %v606_v63 }
 0x7d4   :  { %3118 = vmatpush3.xpose.msk.msra.mxu1 %vm347_vm7, %v698_v0  ;;  %3119 = vmatprep.mubr.msk.f32.mxu1 %vm3545_vm6, %v3544_v22 }
 0x7d5   :  { %3122 = vmatprep.subr.mxu1 %v3544_v22 }
 0x7d7   :  { %3120 = vmatmul.mubr.msk.f32.vlgmr.msra.gmra.mrb[6].mxu1 %vm347_vm7, %v3882_v60 }
 0x7d8   :  { %3124 = vmatprep.mubr.msk.f32.mxu1 %vm3545_vm6, %v3544_v22 }
 0x8a6   :  { %v682_v1 = vpop.f32.mrb[4].mxu1 }
 0x8a7   :  { %v3116_v2 = vpop.f32.mrb[5].mxu1 }
 0x8a8   :  { %v1180_v2 = vld [vmem:[%s4431_s13 + $0x8] sm:$0xff] }
 0x8aa   :  { %v769_v3 = vpop.f32.mrb[6].mxu1 }
 0x8ab   :  { %v773_v4 = vmul.f32 0.25, %v769_v3  ;;  %v3121_v5 = vpop.f32.mrb[7].mxu1 }
 0x8ac   :  { %v1182_v5 = vld [vmem:[%s4431_s13 + $0x18] sm:$0xff] }
 0x8ad   :  { %v774_v6 = vsel %vm423_vm8, %v773_v4, -inf }
 0x8ae   :  { %775 = vmax.xlane.f32.xlu0 %v774_v6 }
 0x8c4   :  { %787 = vrot.lane.b32.xlu0 %v3882_v60, %s4454_s6  ;;  %s4488_s6 = sld [smem:[#allocation19_spill]] }
 0x8c8   :  { %865 = vrot.lane.b32.xlu0 %v3882_v60, %s4458_s1  ;;  %s4490_s1 = smov 96  }
 0x8ca   :  { %v2880_v46 = vld [vmem:[%s4488_s6] ss:$0 sm:$0xff] }
 0x93b   :  { %v776_v7 = vpop.xlane.xlu0 %775 }
 0x93c   :  { %v777_v8 = vsub.f32 %v773_v4, %v776_v7  ;;  %v1181_v4 = vld [vmem:[%s4431_s13 + $0x10] sm:$0xff] }
 0x93d   :  { %v3326_v6 = vpack.c.bf16 %v1182_v5, %v1181_v4 }
 0x93e   :  { %v778_v9 = vmul.f32 1.442695, %v777_v8 }
 0x93f   :  { %v788_v10 = vpop.permute.xlu0 %787 }
 0x940   :  { %3449 = vpow2.f32 %v778_v9  ;;  %3123 = vmatpush3.msk.msra.mxu1 %vm442_vm9, %v788_v10 }
 0x941   :  { %3127 = vmatprep.subr.mxu1 %v3544_v22 }
 0x943   :  { %v866_v17 = vpop.permute.xlu0 %865 }
 0x94a   :  { %v3450_v11 = vpop.eup %3449 }
 0x94b   :  { %v780_v12 = vsel %vm423_vm8, %v3450_v11, 0.0 }
 0x94c   :  { %781 = vadd.xlane.f32.xlu1 %v780_v12 }
 0x95d   :  { %867 = vrot.lane.b32.xlu1 %v3882_v60, %s4462_s10 }
 0x9d9   :  { %v782_v13 = vpop.xlane.xlu1 %781 }
 0x9da   :  { %3451 = vrcp.f32 %v782_v13 }
 0x9dd   :  { %v868_v16 = vpop.permute.xlu1 %867 }
 0x9e4   :  { %v3452_v14 = vpop.eup %3451 }
 0x9e5   :  { %v784_v15 = vmul.f32 %v3452_v14, %v3450_v11  ;;  %v2883_v14 = vld [vmem:[%s4429_s11] ss:$0 sm:$0xff] }
 0x9e7   :  { %2872 = vst.msk [vmem:[%s4442_s24 + $0x10] sm:$0x1f] %vm423_vm8, %v784_v15  ;;  %3125 = vmatmul.mubr.msk.f32.vlgmr.msra.gmra.mrb[8].mxu1 %vm438_vm10, %v784_v15 }
 0x9e8   :  { %3128 = vmatpush3.xpose.msk.msra.mxu1 %vm347_vm7, %v868_v16  ;;  %3129 = vmatprep.mubr.msk.f32.mxu1 %vm3545_vm6, %v3544_v22  ;;  %v2884_v16 = vld [vmem:[%s4430_s12] ss:$0 sm:$0xff] }
 0x9e9   :  { %3132 = vmatprep.subr.mxu1 %v3544_v22 }
 0x9eb   :  { %3130 = vmatmul.mubr.msk.f32.vlgmr.msra.gmra.mrb[10].mxu1 %vm347_vm7, %v866_v17 }
 0x9ec   :  { %3134 = vmatprep.mubr.msk.f32.mxu1 %vm3545_vm6, %v3544_v22 }
 0xaba   :  { %v860_v18 = vpop.f32.mrb[8].mxu1 }
 0xabb   :  { %864 = vst.msk [vmem:[#allocation2 + $0x5] sm:$0x1f] %vm515_vm11, %v860_v18  ;;  %v3126_v19 = vpop.f32.mrb[9].mxu1 }
 0xabe   :  { %v939_v20 = vpop.f32.mrb[10].mxu1 }
 0xabf   :  { %v943_v21 = vmul.f32 0.25, %v939_v20  ;;  %v3131_v23 = vpop.f32.mrb[11].mxu1 }
 0xac1   :  { %v944_v24 = vsel %vm423_vm8, %v943_v21, -inf }
 0xac2   :  { %945 = vmax.xlane.f32.xlu1 %v944_v24  ;;  %v1289_v24 = vld [vmem:[%s4433_s15] sm:$0xff] }
 0xad3   :  { %687 = vrot.lane.b32.xlu1 %v682_v1, %s4464_s27  ;;  %v1179_v1 = vld [vmem:[%s4431_s13] sm:$0xff]  ;;  %s4493_s27 = smov 64  }
 0xad4   :  { %v3322_v3 = vpack.c.bf16 %v1180_v2, %v1179_v1 }
 0xad6   :  { %3323 = vmatprep.subr.bf16.mxu0 %v3322_v3 }
 0xad7   :  { %3325 = vmatpush3.bf16.msra.mxu0 %v3322_v3 }
 0xad8   :  { %3327 = vmatprep.subr.bf16.mxu0 %v3326_v6 }
 0xadb   :  { %3329 = vmatpush3.bf16.msra.mxu0 %v3326_v6 }
 0xb4f   :  { %v946_v25 = vpop.xlane.xlu1 %945 }
 0xb50   :  { %v947_v26 = vsub.f32 %v943_v21, %v946_v25  ;;  %v1290_v25 = vld [vmem:[%s4433_s15 + $0x8] sm:$0xff] }
 0xb52   :  { %v948_v27 = vmul.f32 1.442695, %v947_v26  ;;  %v3330_v26 = vpack.c.bf16 %v1290_v25, %v1289_v24 }
 0xb53   :  { %v688_v28 = vpop.permute.xlu1 %687 }
 0xb54   :  { %3453 = vpow2.f32 %v948_v27  ;;  %691 = vst.msk [vmem:[#allocation2] sm:$0x1f] %vm690_vm13, %v688_v28  ;;  %v1291_v27 = vld [vmem:[%s4433_s15 + $0x10] sm:$0xff]  ;;  %v1292_v28 = vld [vmem:[%s4433_s15 + $0x18] sm:$0xff] }
 0xb5e   :  { %v3454_v29 = vpop.eup %3453 }
 0xb5f   :  { %v950_v30 = vsel %vm423_vm8, %v3454_v29, 0.0 }
 0xb60   :  { %951 = vadd.xlane.f32.xlu0 %v950_v30  ;;  %v1293_v30 = vld [vmem:[%s4433_s15 + $0x20] sm:$0xff] }
 0xb76   :  { %957 = vrot.lane.b32.xlu0 %v3882_v60, %s4456_s28  ;;  %s4491_s28 = smov 112  }
 0xbed   :  { %v952_v31 = vpop.xlane.xlu0 %951 }
 0xbee   :  { %3455 = vrcp.f32 %v952_v31  ;;  %v1294_v31 = vld [vmem:[%s4433_s15 + $0x28] sm:$0xff] }
 0xbf1   :  { %v958_v32 = vpop.permute.xlu0 %957 }
 0xbf2   :  { %3133 = vmatpush3.msk.msra.mxu1 %vm442_vm9, %v958_v32  ;;  %v3338_v32 = vpack.c.bf16 %v1294_v31, %v1293_v30 }
 0xbf3   :  { %3315 = vmatprep.subr.bf16.mxu1 %v3314_v37 }
 0xbf8   :  { %v3456_v33 = vpop.eup %3455 }
 0xbf9   :  { %v954_v34 = vmul.f32 %v3456_v33, %v3454_v29  ;;  %v3334_v29 = vpack.c.bf16 %v1292_v28, %v1291_v27  ;;  %v1295_v33 = vld [vmem:[%s4433_s15 + $0x30] sm:$0xff]  ;;  %v2895_v28 = vld [vmem:[%s4483_s8 + $0x1] ss:$0 sm:$0xff] }
 0xbfb   :  { %2877 = vst.msk [vmem:[%s4442_s24 + $0x18] sm:$0x1f] %vm423_vm8, %v954_v34  ;;  %3135 = vmatmul.mubr.msk.f32.vlgmr.msra.gmra.mrb[12].mxu1 %vm438_vm10, %v954_v34  ;;  %v1296_v34 = vld [vmem:[%s4433_s15 + $0x38] sm:$0xff] }
 0xbfc   :  { %3317 = vmatpush3.bf16.msra.mxu1 %v3314_v37  ;;  %v3342_v35 = vpack.c.bf16 %v1296_v34, %v1295_v33 }
 0xbfd   :  { %3319 = vmatprep.subr.bf16.mxu1 %v3318_v40 }
 0xc00   :  { %3321 = vmatpush3.bf16.msra.mxu1 %v3318_v40 }
 0xc01   :  { %3331 = vmatprep.subr.bf16.mxu1 %v3330_v26 }
 0xcce   :  { %v1030_v41 = vpop.f32.mrb[12].mxu1 }
 0xccf   :  { %1035 = vrot.lane.b32.xlu1 %v1030_v41, %s4487_s3  ;;  %v3136_v42 = vpop.f32.mrb[13].mxu1 }
 0xd41   :  { %v1036_v43 = vpop.permute.xlu1 %1035 }
 0xd42   :  { %1038 = vst.msk [vmem:[#allocation2 + $0x5] sm:$0x1f] %vm690_vm13, %v1036_v43 }
 0xd49   :  { %v1039_v44 = vld [vmem:[#allocation2] sm:$0xff]  ;;  %v1040_v45 = vld [vmem:[#allocation2 + $0x8] sm:$0x3] }
 0xd4a   :  { %3145 = vmatprep.mubr.msk.f32.mxu1 %vm207_vm4, %v1039_v44 }
 0xd4b   :  { %3146 = vmatmul.mubr.msk.f32.vlgmr.msra.gmra.mrb[14].mxu1 %vm207_vm4, %v1040_v45 }
 0xd4c   :  { %3333 = vmatpush3.bf16.msra.mxu1 %v3330_v26 }
 0xd4d   :  { %3335 = vmatprep.subr.bf16.mxu1 %v3334_v29 }
 0xd50   :  { %3337 = vmatpush3.bf16.msra.mxu1 %v3334_v29 }
 0xd51   :  { %3339 = vmatprep.subr.bf16.mxu1 %v3338_v32 }
 0xd54   :  { %3341 = vmatpush3.bf16.msra.mxu1 %v3338_v32  ;;  %v2896_v32 = vld [vmem:[%s4484_s0 + $0x1] ss:$0 sm:$0xff]  ;;  %s4489_s0 = smov 80  }
 0xd55   :  { %3343 = vmatprep.subr.bf16.mxu1 %v3342_v35 }
 0xd58   :  { %3345 = vmatpush3.bf16.msra.mxu1 %v3342_v35 }
 0xd59   :  { %3194 = vmatprep.subr.mxu1 %v3544_v22 }
 0xe1e   :  { %v3147_v47 = vpop.f32.mrb[14].mxu1 }
 0xe1f   :  { %v1130_v48 = vadd.f32 %v3147_v47, %v2880_v46  ;;  %v1124_v49 = vpop.f32.mrb[15].mxu1 }
 0xe20   :  { %v1125_v51 = vadd.f32 %v2880_v46, %v1124_v49 }
 0xe21   :  { %v3954_v53 = vadd.f32 %v1130_v48, %v3804_v52 }
 0xe22   :  { %v3957_v54 = vadd.f32 %v1125_v51, %v3797_v50 }
 0xe23   :  { %v1140_v55 = vsel %vm211_vm5, %v3954_v53, 0.0 }
 0xe24   :  { %1141 = vadd.xlane.f32.xlu1 %v1140_v55  ;;  %v1137_v56 = vsel %vm207_vm4, %v3957_v54, 0.0 }
 0xe25   :  { %1138 = vadd.xlane.f32.xlu0 %v1137_v56 }
 0xeb1   :  { %v1142_v57 = vpop.xlane.xlu1 %1141 }
 0xeb2   :  { %v1144_v58 = vmul.f32 0.03125, %v1142_v57  ;;  %v1139_v59 = vpop.xlane.xlu0 %1138 }
 0xeb3   :  { %v1143_v60 = vmul.f32 0.03125, %v1139_v59 }
 0xeb4   :  { %v1146_v61 = vsub.f32 %v3954_v53, %v1144_v58 }
 0xeb5   :  { %v1145_v52 = vsub.f32 %v3957_v54, %v1143_v60 }
 0xeb6   :  { %v1148_v63 = vmul.f32 %v1146_v61, %v1146_v61 }
 0xeb7   :  { %v1147_v62 = vmul.f32 %v1145_v52, %v1145_v52 }
 0xeb8   :  { %v1152_v0 = vsel %vm211_vm5, %v1148_v63, 0.0 }
 0xeb9   :  { %v1149_v50 = vsel %vm207_vm4, %v1147_v62, 0.0  ;;  %v2888_v62 = vld [vmem:[%s4434_s16] ss:$0 sm:$0xff] }
 0xeba   :  { %1150 = vadd.xlane.f32.xlu0 %v1149_v50 }
 0xebe   :  { %1153 = vadd.xlane.f32.xlu0 %v1152_v0 }
 0xf47   :  { %v1151_v7 = vpop.xlane.xlu0 %1150 }
 0xf48   :  { %v1155_v8 = vmul.f32 0.03125, %v1151_v7 }
 0xf4a   :  { %v1157_v9 = vadd.f32 1e-12, %v1155_v8 }
 0xf4b   :  { %v1154_v10 = vpop.xlane.xlu0 %1153 }
 0xf4c   :  { %3457 = vrsqrt.f32 %v1157_v9  ;;  %v1156_v11 = vmul.f32 0.03125, %v1154_v10 }
 0xf4e   :  { %v1158_v12 = vadd.f32 1e-12, %v1156_v11 }
 0xf50   :  { %3459 = vrsqrt.f32 %v1158_v12 }
 0xf56   :  { %v3458_v13 = vpop.eup %3457 }
 0xf57   :  { %v1161_v15 = vmul.f32 %v3458_v13, %v1145_v52 }
 0xf59   :  { %v1169_v17 = vmul.f32 %v2883_v14, %v1161_v15  ;;  %v2898_v15 = vld [vmem:[%s4482_s4 + $0x28] sm:$0xff] }
 0xf5a   :  { %v3460_v18 = vpop.eup %3459 }
 0xf5b   :  { %v1162_v19 = vmul.f32 %v3460_v18, %v1146_v61  ;;  %v1177_v20 = vadd.f32 %v2884_v16, %v1169_v17  ;;  %v2899_v17 = vld [vmem:[%s4482_s4 + $0x30] sm:$0xff]  ;;  %v2900_v18 = vld [vmem:[%s4482_s4 + $0x38] sm:$0xff] }
 0xf5d   :  { %v1170_v21 = vmul.f32 %v2883_v14, %v1162_v19  ;;  %3156 = vmatprep.mubr.msk.f32.mxu0 %vm207_vm4, %v1177_v20  ;;  %v2897_v14 = vld [vmem:[%s4482_s4 + $0x20] sm:$0xff]  ;;  %v3350_v19 = vpack.c.bf16 %v2900_v18, %v2899_v17 }
 0xf5f   :  { %v1178_v23 = vadd.f32 %v2884_v16, %v1170_v21  ;;  %v3346_v16 = vpack.c.bf16 %v2898_v15, %v2897_v14 }
 0xf61   :  { %3157 = vmatmul.mubr.msk.f32.vlgmr.msra.gmra.mrb[6].mxu0 %vm207_vm4, %v1178_v23  ;;  %3347 = vmatprep.subr.bf16.mxu0 %v3346_v16 }
 0xf62   :  { %3349 = vmatpush3.bf16.msra.mxu0 %v3346_v16 }
 0xf63   :  { %3351 = vmatprep.subr.bf16.mxu0 %v3350_v19 }
 0xf66   :  { %3353 = vmatpush3.bf16.msra.mxu0 %v3350_v19 }
 0xf67   :  { %3189 = vmatprep.subr.mxu0 %v3544_v22 }
0x1034   :  { %v3158_v37 = vpop.f32.mrb[6].mxu0 }
0x1035   :  { %v1268_v38 = vadd.f32 %v3158_v37, %v2885_v36  ;;  %v1262_v39 = vpop.f32.mrb[7].mxu0  ;;  %v2902_v37 = vld [vmem:[%s4485_s2 + $0x1] ss:$0 sm:$0xff]  ;;  %s4492_s2 = smov 48  }
0x1036   :  { %v1263_v40 = vadd.f32 %v2885_v36, %v1262_v39 }
0x1037   :  { %v1272_v41 = vmul.f32 %v1268_v38, %v1268_v38 }
0x1038   :  { %v1271_v42 = vmul.f32 %v1263_v40, %v1263_v40 }
0x1039   :  { %v1274_v43 = vmul.f32 %v1272_v41, %v1268_v38 }
0x103a   :  { %v1273_v44 = vmul.f32 %v1271_v42, %v1263_v40 }
0x103b   :  { %v1276_v45 = vmul.f32 0.044715, %v1274_v43 }
0x103c   :  { %v1275_v46 = vmul.f32 0.044715, %v1273_v44 }
0x103d   :  { %v1278_v47 = vadd.f32 %v1276_v45, %v1268_v38 }
0x103e   :  { %v1277_v48 = vadd.f32 %v1275_v46, %v1263_v40 }
0x103f   :  { %v1280_v49 = vmul.f32 0.7978846, %v1278_v47 }
0x1040   :  { %v1279_v51 = vmul.f32 0.7978846, %v1277_v48 }
0x1041   :  { %3461 = vtanh.f32 %v1280_v49 }
0x1042   :  { %3463 = vtanh.f32 %v1279_v51 }
0x104b   :  { %v3462_v55 = vpop.eup %3461 }
0x104c   :  { %v3464_v56 = vpop.eup %3463  ;;  %v1284_v57 = vadd.f32 1.0, %v3462_v55 }
0x104d   :  { %v1283_v58 = vadd.f32 1.0, %v3464_v56 }
0x104e   :  { %v1286_v59 = vmul.f32 0.5, %v1284_v57 }
0x104f   :  { %v1285_v60 = vmul.f32 0.5, %v1283_v58 }
0x1050   :  { %v1288_v52 = vmul.f32 %v1286_v59, %v1268_v38 }
0x1051   :  { %v1287_v61 = vmul.f32 %v1285_v60, %v1263_v40 }
0x1053   :  { %3175 = vmatprep.mubr.msk.f32.mxu1 %vm113_vm0, %v1287_v61 }
0x1054   :  { %3176 = vmatmul.mubr.msk.f32.vlgmr.msra.gmra.mrb[16].mxu1 %vm113_vm0, %v1288_v52 }
0x1055   :  { %3196 = vmatprep.mubr.msk.f32.mxu1 %vm3545_vm6, %v3544_v22 }
0x1127   :  { %v3177_v50 = vpop.f32.mrb[16].mxu1 }
0x1128   :  { %v1382_v63 = vadd.f32 %v3177_v50, %v2888_v62  ;;  %v1376_v0 = vpop.f32.mrb[17].mxu1 }
0x1129   :  { %v1377_v1 = vadd.f32 %v2888_v62, %v1376_v0 }
0x112a   :  { %v4023_v2 = vadd.f32 %v1382_v63, %v3954_v53 }
0x112b   :  { %v4026_v3 = vadd.f32 %v1377_v1, %v3957_v54 }
0x112c   :  { %2892 = vst.msk [vmem:[%s4441_s23 + $0x18] sm:$0x3] %vm211_vm5, %v4023_v2  ;;  %v1397_v4 = vsel %vm211_vm5, %v4023_v2, 0.0 }
0x112d   :  { %2891 = vst.msk [vmem:[%s4441_s23 + $0x10] sm:$0xff] %vm207_vm4, %v4026_v3  ;;  %1398 = vadd.xlane.f32.xlu1 %v1397_v4  ;;  %v1394_v53 = vsel %vm207_vm4, %v4026_v3, 0.0 }
0x112e   :  { %1395 = vadd.xlane.f32.xlu0 %v1394_v53 }
0x11ba   :  { %v1399_v54 = vpop.xlane.xlu1 %1398 }
0x11bb   :  { %v1401_v5 = vmul.f32 0.03125, %v1399_v54  ;;  %v1396_v6 = vpop.xlane.xlu0 %1395 }
0x11bc   :  { %v1400_v7 = vmul.f32 0.03125, %v1396_v6 }
0x11bd   :  { %v1403_v8 = vsub.f32 %v4023_v2, %v1401_v5 }
0x11be   :  { %v1402_v9 = vsub.f32 %v4026_v3, %v1400_v7 }
0x11bf   :  { %v1405_v10 = vmul.f32 %v1403_v8, %v1403_v8 }
0x11c0   :  { %v1404_v11 = vmul.f32 %v1402_v9, %v1402_v9 }
0x11c1   :  { %v1409_v12 = vsel %vm211_vm5, %v1405_v10, 0.0 }
0x11c2   :  { %1410 = vadd.xlane.f32.xlu1 %v1409_v12  ;;  %v1406_v13 = vsel %vm207_vm4, %v1404_v11, 0.0 }
0x11c3   :  { %1407 = vadd.xlane.f32.xlu0 %v1406_v13 }
0x124f   :  { %v1411_v20 = vpop.xlane.xlu1 %1410 }
0x1250   :  { %v1413_v21 = vmul.f32 0.03125, %v1411_v20  ;;  %v1408_v23 = vpop.xlane.xlu0 %1407 }
0x1251   :  { %v1412_v24 = vmul.f32 0.03125, %v1408_v23 }
0x1252   :  { %v1415_v25 = vadd.f32 1e-12, %v1413_v21 }
0x1253   :  { %v1414_v26 = vadd.f32 1e-12, %v1412_v24 }
0x1254   :  { %3465 = vrsqrt.f32 %v1415_v25 }
0x1255   :  { %3467 = vrsqrt.f32 %v1414_v26 }
0x125e   :  { %v3466_v27 = vpop.eup %3465 }
0x125f   :  { %v3468_v29 = vpop.eup %3467  ;;  %v1419_v30 = vmul.f32 %v3466_v27, %v1403_v8 }
0x1260   :  { %v1418_v31 = vmul.f32 %v3468_v29, %v1402_v9 }
0x1261   :  { %v1427_v33 = vmul.f32 %v2895_v28, %v1419_v30 }
0x1262   :  { %v1426_v34 = vmul.f32 %v2895_v28, %v1418_v31 }
0x1263   :  { %v1435_v36 = vadd.f32 %v2896_v32, %v1427_v33 }
0x1264   :  { %v1434_v35 = vadd.f32 %v2896_v32, %v1426_v34 }
0x1266   :  { %3186 = vmatprep.mubr.msk.f32.mxu0 %vm207_vm4, %v1434_v35 }
0x1267   :  { %3187 = vmatmul.mubr.msk.f32.vlgmr.msra.gmra.mrb[8].mxu0 %vm207_vm4, %v1435_v36 }
0x1268   :  { %3191 = vmatprep.mubr.msk.f32.mxu0 %vm3545_vm6, %v3544_v22 }
0x133a   :  { %v3188_v38 = vpop.f32.mrb[8].mxu0 }
0x133b   :  { %v1527_v39 = vadd.f32 %v3188_v38, %v2902_v37  ;;  %v1521_v40 = vpop.f32.mrb[9].mxu0 }
0x133c   :  { %v4072_v41 = vadd.f32 %v2902_v37, %v1521_v40 }
0x133d   :  { %v1875_v42 = vrot.slane %v1527_v39, 5 }
0x133e   :  { %1701 = vrot.lane.b32.xlu1 %v4072_v41, %s4489_s0  ;;  %1531 = vrot.lane.b32.xlu0 %v4072_v41, %s4490_s1  ;;  %v1874_v43 = vrot.slane %v4072_v41, 5 }
0x1340   :  { %v4080_v44 = vsel %vm693_vm12, %v1874_v43, %v1875_v42 }
0x1342   :  { %1699 = vrot.lane.b32.xlu1 %v4072_v41, %s4491_s28  ;;  %2047 = vrot.lane.b32.xlu0 %v4080_v44, %s4489_s0 }
0x1346   :  { %1877 = vrot.lane.b32.xlu1 %v4080_v44, %s4490_s1 }
0x134a   :  { %2045 = vrot.lane.b32.xlu1 %v4080_v44, %s4491_s28 }
0x13b0   :  { %v1702_v45 = vpop.permute.xlu1 %1701  ;;  %v1532_v46 = vpop.permute.xlu0 %1531 }
0x13b1   :  { %3190 = vmatpush3.xpose.msk.msra.mxu0 %vm347_vm7, %v1532_v46 }
0x13b2   :  { %3199 = vmatprep.subr.mxu0 %v3544_v22 }
0x13b4   :  { %v1700_v47 = vpop.permute.xlu1 %1699  ;;  %3192 = vmatmul.mubr.msk.f32.vlgmr.msra.gmra.mrb[10].mxu0 %vm347_vm7, %v4072_v41  ;;  %v2048_v49 = vpop.permute.xlu0 %2047 }
0x13b5   :  { %3200 = vmatpush3.xpose.msk.msra.mxu0 %vm347_vm7, %v1702_v45  ;;  %3201 = vmatprep.mubr.msk.f32.mxu0 %vm3545_vm6, %v3544_v22 }
0x13b6   :  { %3209 = vmatprep.subr.mxu0 %v3544_v22 }
0x13b8   :  { %3202 = vmatmul.mubr.msk.f32.vlgmr.msra.gmra.mrb[12].mxu0 %vm347_vm7, %v1700_v47  ;;  %v1878_v48 = vpop.permute.xlu1 %1877 }
0x13b9   :  { %3210 = vmatpush3.xpose.msk.msra.mxu0 %vm347_vm7, %v1878_v48  ;;  %3211 = vmatprep.mubr.msk.f32.mxu0 %vm3545_vm6, %v3544_v22  ;;  %v2925_v48 = vld [vmem:[%s4486_s30 + $0x20] sm:$0xff] }
0x13ba   :  { %3219 = vmatprep.subr.mxu0 %v3544_v22 }
0x13bc   :  { %3212 = vmatmul.mubr.msk.f32.vlgmr.msra.gmra.mrb[14].mxu0 %vm347_vm7, %v4080_v44  ;;  %v2046_v51 = vpop.permute.xlu1 %2045 }
0x13bd   :  { %3220 = vmatpush3.xpose.msk.msra.mxu0 %vm347_vm7, %v2048_v49  ;;  %3221 = vmatprep.mubr.msk.f32.mxu0 %vm3545_vm6, %v3544_v22  ;;  %v2926_v49 = vld [vmem:[%s4486_s30 + $0x28] sm:$0xff] }
0x13c0   :  { %3222 = vmatmul.mubr.msk.f32.vlgmr.msra.gmra.mrb[16].mxu0 %vm347_vm7, %v2046_v51  ;;  %v3354_v51 = vpack.c.bf16 %v2926_v49, %v2925_v48  ;;  %v2942_v49 = vld [vmem:[%s4432_s14 + $0x1] ss:$0 sm:$0xff] }
0x13c2   :  { %3355 = vmatprep.subr.bf16.mxu0 %v3354_v51 }
0x13c3   :  { %3357 = vmatpush3.bf16.msra.mxu0 %v3354_v51 }
0x1487   :  { %v1603_v55 = vpop.f32.mrb[10].mxu0 }
0x1488   :  { %v1607_v56 = vmul.f32 0.25, %v1603_v55  ;;  %v3193_v57 = vpop.f32.mrb[11].mxu0  ;;  %v2927_v55 = vld [vmem:[%s4486_s30 + $0x30] sm:$0xff] }
0x148a   :  { %v1608_v58 = vsel %vm423_vm8, %v1607_v56, -inf }
0x148b   :  { %v1773_v59 = vpop.f32.mrb[12].mxu0  ;;  %1609 = vmax.xlane.f32.xlu0 %v1608_v58 }
0x148c   :  { %v1777_v60 = vmul.f32 0.25, %v1773_v59  ;;  %v3203_v61 = vpop.f32.mrb[13].mxu0 }
0x148e   :  { %v1778_v52 = vsel %vm423_vm8, %v1777_v60, -inf }
0x148f   :  { %1779 = vmax.xlane.f32.xlu1 %v1778_v52  ;;  %v1949_v62 = vpop.f32.mrb[14].mxu0 }
0x1490   :  { %v1953_v50 = vmul.f32 0.25, %v1949_v62  ;;  %v3213_v63 = vpop.f32.mrb[15].mxu0 }
0x1492   :  { %v1954_v0 = vsel %vm423_vm8, %v1953_v50, -inf }
0x1493   :  { %1955 = vmax.xlane.f32.xlu0 %v1954_v0  ;;  %v2119_v1 = vpop.f32.mrb[16].mxu0 }
0x1494   :  { %v2123_v4 = vmul.f32 0.25, %v2119_v1  ;;  %v3223_v53 = vpop.f32.mrb[17].mxu0 }
0x1496   :  { %v2124_v54 = vsel %vm423_vm8, %v2123_v4, -inf }
0x1497   :  { %2125 = vmax.xlane.f32.xlu0 %v2124_v54 }
0x1518   :  { %v1610_v5 = vpop.xlane.xlu0 %1609 }
0x1519   :  { %v1611_v6 = vsub.f32 %v1607_v56, %v1610_v5  ;;  %v2928_v56 = vld [vmem:[%s4486_s30 + $0x38] sm:$0xff] }
0x151a   :  { %v3358_v57 = vpack.c.bf16 %v2928_v56, %v2927_v55 }
0x151b   :  { %v1612_v7 = vmul.f32 1.442695, %v1611_v6 }
0x151c   :  { %v1780_v8 = vpop.xlane.xlu1 %1779  ;;  %3359 = vmatprep.subr.bf16.mxu0 %v3358_v57 }
0x151d   :  { %3469 = vpow2.f32 %v1612_v7  ;;  %v1781_v9 = vsub.f32 %v1777_v60, %v1780_v8  ;;  %3361 = vmatpush3.bf16.msra.mxu0 %v3358_v57 }
0x151f   :  { %v1782_v10 = vmul.f32 1.442695, %v1781_v9 }
0x1520   :  { %v1956_v11 = vpop.xlane.xlu0 %1955 }
0x1521   :  { %3471 = vpow2.f32 %v1782_v10  ;;  %v1957_v12 = vsub.f32 %v1953_v50, %v1956_v11  ;;  %v2930_v50 = vld [vmem:[%s4488_s6 + $0x1] ss:$0 sm:$0xff] }
0x1523   :  { %v1958_v13 = vmul.f32 1.442695, %v1957_v12 }
0x1524   :  { %v2126_v20 = vpop.xlane.xlu0 %2125 }
0x1525   :  { %3473 = vpow2.f32 %v1958_v13  ;;  %v2127_v21 = vsub.f32 %v2123_v4, %v2126_v20 }
0x1527   :  { %v3470_v14 = vpop.eup %3469  ;;  %v2128_v23 = vmul.f32 1.442695, %v2127_v21 }
0x1528   :  { %v1614_v15 = vsel %vm423_vm8, %v3470_v14, 0.0 }
0x1529   :  { %1615 = vadd.xlane.f32.xlu0 %v1614_v15  ;;  %3475 = vpow2.f32 %v2128_v23  ;;  %v2937_v15 = vld [vmem:[%s4431_s13 + $0x20] sm:$0xff] }
0x152b   :  { %v3472_v16 = vpop.eup %3471 }
0x152c   :  { %v1784_v17 = vsel %vm423_vm8, %v3472_v16, 0.0 }
0x152d   :  { %1785 = vadd.xlane.f32.xlu1 %v1784_v17 }
0x152f   :  { %v3474_v18 = vpop.eup %3473 }
0x1530   :  { %v1960_v19 = vsel %vm423_vm8, %v3474_v18, 0.0 }
0x1531   :  { %1961 = vadd.xlane.f32.xlu0 %v1960_v19  ;;  %v2940_v19 = vld [vmem:[%s4431_s13 + $0x38] sm:$0xff] }
0x1533   :  { %v3476_v24 = vpop.eup %3475 }
0x1534   :  { %v2130_v25 = vsel %vm423_vm8, %v3476_v24, 0.0 }
0x153e   :  { %1791 = vrot.lane.b32.xlu1 %v4072_v41, %s4492_s2 }
0x1542   :  { %1967 = vrot.lane.b32.xlu1 %v4080_v44, %s4493_s27 }
0x1547   :  { %1621 = vrot.lane.b32.xlu0 %v4072_v41, %s4493_s27 }
0x1566   :  { %2131 = vadd.xlane.f32.xlu1 %v2130_v25 }
0x1577   :  { %2137 = vrot.lane.b32.xlu1 %v4080_v44, %s4492_s2 }
0x15b6   :  { %v1616_v26 = vpop.xlane.xlu0 %1615 }
0x15b7   :  { %3477 = vrcp.f32 %v1616_v26 }
0x15ba   :  { %v1786_v27 = vpop.xlane.xlu1 %1785 }
0x15bb   :  { %3479 = vrcp.f32 %v1786_v27 }
0x15be   :  { %v1962_v28 = vpop.xlane.xlu0 %1961  ;;  %v1792_v31 = vpop.permute.xlu1 %1791 }
0x15bf   :  { %3481 = vrcp.f32 %v1962_v28 }
0x15c1   :  { %v3478_v29 = vpop.eup %3477 }
0x15c2   :  { %v1618_v30 = vmul.f32 %v3478_v29, %v3470_v14  ;;  %v1622_v32 = vpop.permute.xlu0 %1621  ;;  %v1968_v35 = vpop.permute.xlu1 %1967  ;;  %v2935_v29 = vld [vmem:[%s4429_s11 + $0x1] ss:$0 sm:$0xff] }
0x15c3   :  { %3195 = vmatpush3.msk.msra.mxu1 %vm442_vm9, %v1622_v32 }
0x15c4   :  { %2907 = vst.msk [vmem:[%s4442_s24 + $0x20] sm:$0x1f] %vm423_vm8, %v1618_v30  ;;  %3197 = vmatmul.mubr.msk.f32.vlgmr.msra.gmra.mrb[18].mxu1 %vm438_vm10, %v1618_v30  ;;  %3204 = vmatprep.subr.mxu1 %v3544_v22 }
0x15c5   :  { %v3480_v33 = vpop.eup %3479  ;;  %3205 = vmatpush3.msk.msra.mxu1 %vm442_vm9, %v1792_v31  ;;  %3206 = vmatprep.mubr.msk.f32.mxu1 %vm3545_vm6, %v3544_v22  ;;  %v2936_v31 = vld [vmem:[%s4430_s12 + $0x1] ss:$0 sm:$0xff] }
0x15c6   :  { %v1788_v34 = vmul.f32 %v3480_v33, %v3472_v16  ;;  %3214 = vmatprep.subr.mxu1 %v3544_v22  ;;  %v2938_v16 = vld [vmem:[%s4431_s13 + $0x28] sm:$0xff] }
0x15c7   :  { %v3362_v17 = vpack.c.bf16 %v2938_v16, %v2937_v15 }
0x15c8   :  { %2912 = vst.msk [vmem:[%s4442_s24 + $0x28] sm:$0x1f] %vm423_vm8, %v1788_v34  ;;  %3207 = vmatmul.mubr.msk.f32.vlgmr.msra.gmra.mrb[20].mxu1 %vm438_vm10, %v1788_v34 }
0x15c9   :  { %v3482_v36 = vpop.eup %3481  ;;  %3215 = vmatpush3.msk.msra.mxu1 %vm442_vm9, %v1968_v35  ;;  %3216 = vmatprep.mubr.msk.f32.mxu1 %vm3545_vm6, %v3544_v22 }
0x15ca   :  { %v1964_v37 = vmul.f32 %v3482_v36, %v3474_v18  ;;  %3224 = vmatprep.subr.mxu1 %v3544_v22  ;;  %v2939_v18 = vld [vmem:[%s4431_s13 + $0x30] sm:$0xff] }
0x15cb   :  { %v3366_v20 = vpack.c.bf16 %v2940_v19, %v2939_v18 }
0x15cc   :  { %2917 = vst.msk [vmem:[%s4442_s24 + $0x30] sm:$0x1f] %vm423_vm8, %v1964_v37  ;;  %3217 = vmatmul.mubr.msk.f32.vlgmr.msra.gmra.mrb[22].mxu1 %vm438_vm10, %v1964_v37 }
0x15cd   :  { %3226 = vmatprep.mubr.msk.f32.mxu1 %vm3545_vm6, %v3544_v22 }
0x15f3   :  { %v2132_v38 = vpop.xlane.xlu1 %2131 }
0x15f4   :  { %3483 = vrcp.f32 %v2132_v38  ;;  %v2945_v38 = vld [vmem:[%s4433_s15 + $0x40] sm:$0xff] }
0x15f7   :  { %v2138_v39 = vpop.permute.xlu1 %2137 }
0x15f8   :  { %3225 = vmatpush3.msk.msra.mxu1 %vm442_vm9, %v2138_v39  ;;  %v2946_v39 = vld [vmem:[%s4433_s15 + $0x48] sm:$0xff] }
0x15f9   :  { %3363 = vmatprep.subr.bf16.mxu1 %v3362_v17 }
0x15fe   :  { %v3484_v40 = vpop.eup %3483 }
0x15ff   :  { %v2134_v41 = vmul.f32 %v3484_v40, %v3476_v24  ;;  %v3370_v40 = vpack.c.bf16 %v2946_v39, %v2945_v38 }
0x1601   :  { %2922 = vst.msk [vmem:[%s4442_s24 + $0x38] sm:$0x1f] %vm423_vm8, %v2134_v41  ;;  %3227 = vmatmul.mubr.msk.f32.vlgmr.msra.gmra.mrb[24].mxu1 %vm438_vm10, %v2134_v41  ;;  %3371 = vmatprep.subr.bf16.mxu0 %v3370_v40  ;;  %v2947_v41 = vld [vmem:[%s4433_s15 + $0x50] sm:$0xff] }
0x1602   :  { %3365 = vmatpush3.bf16.msra.mxu1 %v3362_v17 }
0x1603   :  { %3367 = vmatprep.subr.bf16.mxu1 %v3366_v20 }
0x1606   :  { %3369 = vmatpush3.bf16.msra.mxu1 %v3366_v20 }
0x1697   :  { %v1694_v42 = vpop.f32.mrb[18].mxu1 }
0x1698   :  { %1698 = vst.msk [vmem:[#allocation2] sm:$0x1f] %vm515_vm11, %v1694_v42  ;;  %v3198_v43 = vpop.f32.mrb[19].mxu1  ;;  %v2948_v42 = vld [vmem:[%s4433_s15 + $0x58] sm:$0xff] }
0x1699   :  { %v2949_v43 = vld [vmem:[%s4433_s15 + $0x60] sm:$0xff] }
0x169b   :  { %v1864_v44 = vpop.f32.mrb[20].mxu1 }
0x169c   :  { %1869 = vrot.lane.b32.xlu0 %v1864_v44, %s4487_s3  ;;  %v3208_v45 = vpop.f32.mrb[21].mxu1  ;;  %v2950_v44 = vld [vmem:[%s4433_s15 + $0x68] sm:$0xff] }
0x169d   :  { %v3378_v45 = vpack.c.bf16 %v2950_v44, %v2949_v43 }
0x169f   :  { %v2040_v46 = vpop.f32.mrb[22].mxu1 }
0x16a0   :  { %2044 = vst.msk [vmem:[#allocation2 + $0x5] sm:$0x1f] %vm515_vm11, %v2040_v46  ;;  %v3218_v47 = vpop.f32.mrb[23].mxu1  ;;  %v2951_v46 = vld [vmem:[%s4433_s15 + $0x70] sm:$0xff] }
0x16a1   :  { %v2952_v47 = vld [vmem:[%s4433_s15 + $0x78] sm:$0xff] }
0x16a2   :  { %v3382_v48 = vpack.c.bf16 %v2952_v47, %v2951_v46  ;;  %v2708_v46 = vld [vmem:[%s4439_s21 + $0x8] sm:$0xff]  ;;  %v2725_v47 = vld [vmem:[%s4439_s21 + $0x90] sm:$0xff] }
0x16d4   :  { %v2210_v58 = vpop.f32.mrb[24].mxu1 }
0x16d5   :  { %2215 = vrot.lane.b32.xlu1 %v2210_v58, %s4487_s3  ;;  %v3228_v59 = vpop.f32.mrb[25].mxu1 }
0x170e   :  { %v1870_v60 = vpop.permute.xlu0 %1869 }
0x170f   :  { %1872 = vst.msk [vmem:[#allocation2] sm:$0x1f] %vm690_vm13, %v1870_v60 }
0x1747   :  { %v2216_v61 = vpop.permute.xlu1 %2215 }
0x1748   :  { %2218 = vst.msk [vmem:[#allocation2 + $0x5] sm:$0x1f] %vm690_vm13, %v2216_v61 }
0x174f   :  { %v2219_v52 = vld [vmem:[#allocation2] sm:$0xff]  ;;  %v2220_v62 = vld [vmem:[#allocation2 + $0x8] sm:$0x3] }
0x1750   :  { %3237 = vmatprep.mubr.msk.f32.mxu0 %vm207_vm4, %v2219_v52 }
0x1751   :  { %3238 = vmatmul.mubr.msk.f32.vlgmr.msra.gmra.mrb[18].mxu0 %vm207_vm4, %v2220_v62 }
0x1752   :  { %3373 = vmatpush3.bf16.msra.mxu0 %v3370_v40 }
0x1824   :  { %v3239_v63 = vpop.f32.mrb[18].mxu0 }
0x1825   :  { %v2312_v0 = vadd.f32 %v3239_v63, %v2930_v50  ;;  %v2306_v1 = vpop.f32.mrb[19].mxu0 }
0x1826   :  { %v2307_v4 = vadd.f32 %v2930_v50, %v2306_v1 }
0x1827   :  { %v4182_v53 = vadd.f32 %v2312_v0, %v4023_v2 }
0x1828   :  { %v4185_v54 = vadd.f32 %v2307_v4, %v4026_v3 }
0x1829   :  { %v2324_v5 = vsel %vm211_vm5, %v4182_v53, 0.0 }
0x182a   :  { %2325 = vadd.xlane.f32.xlu1 %v2324_v5  ;;  %v2321_v6 = vsel %vm207_vm4, %v4185_v54, 0.0 }
0x182b   :  { %2322 = vadd.xlane.f32.xlu0 %v2321_v6 }
0x18b7   :  { %v2326_v7 = vpop.xlane.xlu1 %2325 }
0x18b8   :  { %v2328_v8 = vmul.f32 0.03125, %v2326_v7  ;;  %v2323_v9 = vpop.xlane.xlu0 %2322 }
0x18b9   :  { %v2327_v10 = vmul.f32 0.03125, %v2323_v9 }
0x18ba   :  { %v2330_v11 = vsub.f32 %v4182_v53, %v2328_v8 }
0x18bb   :  { %v2329_v2 = vsub.f32 %v4185_v54, %v2327_v10 }
0x18bc   :  { %v2332_v13 = vmul.f32 %v2330_v11, %v2330_v11 }
0x18bd   :  { %v2331_v12 = vmul.f32 %v2329_v2, %v2329_v2 }
0x18be   :  { %v2336_v14 = vsel %vm211_vm5, %v2332_v13, 0.0 }
0x18bf   :  { %v2333_v3 = vsel %vm207_vm4, %v2331_v12, 0.0 }
0x18c0   :  { %2334 = vadd.xlane.f32.xlu0 %v2333_v3 }
0x18c4   :  { %2337 = vadd.xlane.f32.xlu0 %v2336_v14 }
0x194d   :  { %v2335_v21 = vpop.xlane.xlu0 %2334 }
0x194e   :  { %v2339_v23 = vmul.f32 0.03125, %v2335_v21 }
0x1950   :  { %v2341_v24 = vadd.f32 1e-12, %v2339_v23  ;;  %v2614_v23 = vld [vmem:[%s4437_s19 + $0x18] sm:$0xff] }
0x1951   :  { %v2338_v25 = vpop.xlane.xlu0 %2337 }
0x1952   :  { %3485 = vrsqrt.f32 %v2341_v24  ;;  %v2340_v26 = vmul.f32 0.03125, %v2338_v25  ;;  %v2611_v25 = vld [vmem:[%s4437_s19] sm:$0xff] }
0x1954   :  { %v2342_v27 = vadd.f32 1e-12, %v2340_v26  ;;  %v2613_v26 = vld [vmem:[%s4437_s19 + $0x10] sm:$0xff] }
0x1956   :  { %3487 = vrsqrt.f32 %v2342_v27  ;;  %v3388_v27 = vpack.c.bf16 %v2613_v26, %v2611_v25  ;;  %v2721_v25 = vld [vmem:[%s4439_s21 + $0x70] sm:$0xff]  ;;  %v2722_v26 = vld [vmem:[%s4439_s21 + $0x78] sm:$0xff] }
0x195c   :  { %v3486_v28 = vpop.eup %3485 }
0x195d   :  { %v2345_v30 = vmul.f32 %v3486_v28, %v2329_v2  ;;  %v2954_v2 = vld [vmem:[%s4434_s16 + $0x1] ss:$0 sm:$0xff]  ;;  %v2616_v28 = vld [vmem:[%s4437_s19 + $0x28] sm:$0xff] }
0x195f   :  { %v2353_v32 = vmul.f32 %v2935_v29, %v2345_v30  ;;  %v2615_v30 = vld [vmem:[%s4437_s19 + $0x20] sm:$0xff] }
0x1960   :  { %v3488_v33 = vpop.eup %3487 }
0x1961   :  { %v2346_v34 = vmul.f32 %v3488_v33, %v2330_v11  ;;  %v2361_v35 = vadd.f32 %v2936_v31, %v2353_v32  ;;  %v2617_v32 = vld [vmem:[%s4437_s19 + $0x30] sm:$0xff] }
0x1962   :  { %v3392_v33 = vpack.c.bf16 %v2617_v32, %v2615_v30 }
0x1963   :  { %v2354_v36 = vmul.f32 %v2935_v29, %v2346_v34  ;;  %3248 = vmatprep.mubr.msk.f32.mxu1 %vm207_vm4, %v2361_v35  ;;  %v2618_v29 = vld [vmem:[%s4437_s19 + $0x38] sm:$0xff]  ;;  %v2723_v34 = vld [vmem:[%s4439_s21 + $0x80] sm:$0xff]  ;;  %v2724_v35 = vld [vmem:[%s4439_s21 + $0x88] sm:$0xff] }
0x1965   :  { %v2362_v37 = vadd.f32 %v2936_v31, %v2354_v36  ;;  %v3390_v31 = vpack.c.bf16 %v2618_v29, %v2616_v28  ;;  %v3394_v36 = vpack.c.bf16 %v2724_v35, %v2723_v34  ;;  %v2621_v28 = vlaneseq }
0x1967   :  { %3249 = vmatmul.mubr.msk.f32.vlgmr.msra.gmra.mrb[26].mxu1 %vm207_vm4, %v2362_v37  ;;  %v2622_v29 = vshrl.u32 %v2621_v28, 7 }
0x1968   :  { %2698 = vmatprep.mubr.f32.mxu1 %v3544_v22  ;;  %v3374_v22 = vpack.c.bf16 %v2948_v42, %v2947_v41  ;;  %v2959_v41 = vld [vmem:[%s4435_s17] ss:$0 sm:$0xff] }
0x1969   :  { %v2623_v30 = vsub.s32 0, %v2622_v29  ;;  %v2627_v32 = vsub.s32 1, %v2622_v29 }
0x196a   :  { %3375 = vmatprep.subr.bf16.mxu0 %v3374_v22 }
0x196b   :  { %3377 = vmatpush3.bf16.msra.mxu0 %v3374_v22  ;;  %v2960_v22 = vld [vmem:[%s4436_s18] ss:$0 sm:$0xff] }
0x196c   :  { %3379 = vmatprep.subr.bf16.mxu0 %v3378_v45 }
0x196f   :  { %3381 = vmatpush3.bf16.msra.mxu0 %v3378_v45  ;;  %v2707_v45 = vld [vmem:[%s4439_s21] sm:$0xff] }
0x1970   :  { %3383 = vmatprep.subr.bf16.mxu0 %v3382_v48 }
0x1973   :  { %3385 = vmatpush3.bf16.msra.mxu0 %v3382_v48  ;;  %v2726_v48 = vld [vmem:[%s4439_s21 + $0x98] sm:$0xff] }
0x1a3a   :  { %v3250_v51 = vpop.f32.mrb[26].mxu1 }
0x1a3b   :  { %v2454_v55 = vadd.f32 %v3250_v51, %v2942_v49  ;;  %v2448_v56 = vpop.f32.mrb[27].mxu1  ;;  %v3398_v51 = vpack.c.bf16 %v2726_v48, %v2725_v47 }
0x1a3c   :  { %v2449_v57 = vadd.f32 %v2942_v49, %v2448_v56  ;;  %v3396_v49 = vpack.c.bf16 %v2708_v46, %v2707_v45  ;;  %v2710_v56 = vld [vmem:[%s4439_s21 + $0x18] sm:$0xff] }
0x1a3d   :  { %v2458_v58 = vmul.f32 %v2454_v55, %v2454_v55 }
0x1a3e   :  { %v2457_v59 = vmul.f32 %v2449_v57, %v2449_v57 }
0x1a3f   :  { %v2460_v60 = vmul.f32 %v2458_v58, %v2454_v55  ;;  %v2727_v58 = vld [vmem:[%s4439_s21 + $0xa0] sm:$0xff] }
0x1a40   :  { %v2459_v61 = vmul.f32 %v2457_v59, %v2449_v57  ;;  %v2728_v59 = vld [vmem:[%s4439_s21 + $0xa8] sm:$0xff] }
0x1a41   :  { %v2462_v52 = vmul.f32 0.044715, %v2460_v60 }
0x1a42   :  { %v2461_v62 = vmul.f32 0.044715, %v2459_v61  ;;  %v3402_v61 = vpack.c.bf16 %v2728_v59, %v2727_v58 }
0x1a43   :  { %v2464_v50 = vadd.f32 %v2462_v52, %v2454_v55  ;;  %v2711_v52 = vld [vmem:[%s4439_s21 + $0x20] sm:$0xff] }
0x1a44   :  { %v2463_v63 = vadd.f32 %v2461_v62, %v2449_v57  ;;  %v2712_v62 = vld [vmem:[%s4439_s21 + $0x28] sm:$0xff] }
0x1a45   :  { %v2466_v0 = vmul.f32 0.7978846, %v2464_v50  ;;  %v2729_v50 = vld [vmem:[%s4439_s21 + $0xb0] sm:$0xff] }
0x1a46   :  { %v2465_v1 = vmul.f32 0.7978846, %v2463_v63  ;;  %v2730_v63 = vld [vmem:[%s4439_s21 + $0xb8] sm:$0xff] }
0x1a47   :  { %3489 = vtanh.f32 %v2466_v0  ;;  %v3404_v0 = vpack.c.bf16 %v2712_v62, %v2711_v52 }
0x1a48   :  { %3491 = vtanh.f32 %v2465_v1  ;;  %v3406_v1 = vpack.c.bf16 %v2730_v63, %v2729_v50 }
0x1a51   :  { %v3490_v4 = vpop.eup %3489 }
0x1a52   :  { %v3492_v5 = vpop.eup %3491  ;;  %v2470_v6 = vadd.f32 1.0, %v3490_v4  ;;  %v2713_v4 = vld [vmem:[%s4439_s21 + $0x30] sm:$0xff] }
0x1a53   :  { %v2469_v7 = vadd.f32 1.0, %v3492_v5  ;;  %v2714_v5 = vld [vmem:[%s4439_s21 + $0x38] sm:$0xff] }
0x1a54   :  { %v2472_v8 = vmul.f32 0.5, %v2470_v6  ;;  %v2731_v6 = vld [vmem:[%s4439_s21 + $0xc0] sm:$0xff] }
0x1a55   :  { %v2471_v9 = vmul.f32 0.5, %v2469_v7  ;;  %v2732_v7 = vld [vmem:[%s4439_s21 + $0xc8] sm:$0xff] }
0x1a56   :  { %v2474_v11 = vmul.f32 %v2472_v8, %v2454_v55  ;;  %v2709_v55 = vld [vmem:[%s4439_s21 + $0x10] sm:$0xff]  ;;  %v3408_v8 = vpack.c.bf16 %v2714_v5, %v2713_v4 }
0x1a57   :  { %v2473_v10 = vmul.f32 %v2471_v9, %v2449_v57  ;;  %v3400_v60 = vpack.c.bf16 %v2710_v56, %v2709_v55  ;;  %v3410_v9 = vpack.c.bf16 %v2732_v7, %v2731_v6 }
0x1a59   :  { %3267 = vmatprep.mubr.msk.f32.mxu0 %vm113_vm0, %v2473_v10  ;;  %v2715_v10 = vld [vmem:[%s4439_s21 + $0x40] sm:$0xff] }
0x1a5a   :  { %3268 = vmatmul.mubr.msk.f32.vlgmr.msra.gmra.mrb[20].mxu0 %vm113_vm0, %v2474_v11  ;;  %v2716_v11 = vld [vmem:[%s4439_s21 + $0x48] sm:$0xff] }
0x1b2d   :  { %v3269_v12 = vpop.f32.mrb[20].mxu0 }
0x1b2e   :  { %v2570_v3 = vadd.f32 %v3269_v12, %v2954_v2  ;;  %v2564_v13 = vpop.f32.mrb[21].mxu0  ;;  %v2734_v12 = vld [vmem:[%s4439_s21 + $0xd8] sm:$0xff] }
0x1b2f   :  { %v2565_v14 = vadd.f32 %v2954_v2, %v2564_v13  ;;  %v2733_v2 = vld [vmem:[%s4439_s21 + $0xd0] sm:$0xff] }
0x1b30   :  { %v2574_v15 = vadd.f32 %v2570_v3, %v4182_v53  ;;  %v3412_v3 = vpack.c.bf16 %v2716_v11, %v2715_v10  ;;  %v3414_v13 = vpack.c.bf16 %v2734_v12, %v2733_v2 }
0x1b31   :  { %v2573_v16 = vadd.f32 %v2565_v14, %v4185_v54  ;;  %v2612_v54 = vld [vmem:[%s4437_s19 + $0x8] sm:$0xff]  ;;  %v2717_v14 = vld [vmem:[%s4439_s21 + $0x50] sm:$0xff] }
0x1b32   :  { %2958 = vst.msk [vmem:[%s4441_s23 + $0x28] sm:$0x3] %vm211_vm5, %v2574_v15  ;;  %v3386_v24 = vpack.c.bf16 %v2614_v23, %v2612_v54  ;;  %v2718_v15 = vld [vmem:[%s4439_s21 + $0x58] sm:$0xff]  ;;  %v2737_v54 = vld [vmem:[%s4439_s21 + $0xf0] sm:$0xff] }
0x1b33   :  { %2957 = vst.msk [vmem:[%s4441_s23 + $0x20] sm:$0xff] %vm207_vm4, %v2573_v16  ;;  %v2580_v17 = vsel %vm207_vm4, %v2573_v16, 0.0  ;;  %v2738_v23 = vld [vmem:[%s4439_s21 + $0xf8] sm:$0xff] }
0x1b34   :  { %2581 = vadd.xlane.f32.xlu0 %v2580_v17  ;;  %3387 = vmatprep.subr.bf16.mxu1 %v3386_v24  ;;  %v2736_v17 = vld [vmem:[%s4439_s21 + $0xe8] sm:$0xff]  ;;  %v3422_v24 = vpack.c.bf16 %v2738_v23, %v2737_v54 }
0x1b35   :  { %3389 = vmatpush1.bf16.msra.mxu1 %v3388_v27  ;;  %v3424_v27 = vpack.c.bf16 %v2722_v26, %v2721_v25 }
0x1b36   :  { %3391 = vmatprep.subr.bf16.mxu1 %v3390_v31  ;;  %v2619_v31 = vld [vmem:[%s4438_s20] sm:$0x3] }
0x1b37   :  { %v2628_v34 = vrot.slane %v2619_v31, %v2627_v32 }
0x1b39   :  { %3393 = vmatpush1.bf16.msra.mxu1 %v3392_v33  ;;  %v2624_v33 = vrot.slane %v2619_v31, %v2623_v30 }
0x1b3a   :  { %3395 = vmatprep.subr.bf16.mxu1 %v3394_v36 }
0x1bc1   :  { %v2582_v18 = vpop.xlane.xlu0 %2581 }
0x1bc2   :  { %v2583_v19 = vmul.f32 0.03125, %v2582_v18  ;;  %v3416_v18 = vpack.c.bf16 %v2718_v15, %v2717_v14 }
0x1bc4   :  { %v2584_v20 = vsub.f32 %v2573_v16, %v2583_v19  ;;  %v2735_v16 = vld [vmem:[%s4439_s21 + $0xe0] sm:$0xff] }
0x1bc5   :  { %v3418_v19 = vpack.c.bf16 %v2736_v17, %v2735_v16 }
0x1bc6   :  { %v2585_v21 = vmul.f32 %v2584_v20, %v2584_v20 }
0x1bc8   :  { %v2586_v53 = vsel %vm207_vm4, %v2585_v21, 0.0  ;;  %v2720_v21 = vld [vmem:[%s4439_s21 + $0x68] sm:$0xff] }
0x1bc9   :  { %2587 = vadd.xlane.f32.xlu1 %v2586_v53 }
0x1c56   :  { %v2588_v37 = vpop.xlane.xlu1 %2587 }
0x1c57   :  { %v2589_v38 = vmul.f32 0.03125, %v2588_v37 }
0x1c59   :  { %v2590_v39 = vadd.f32 1e-12, %v2589_v38 }
0x1c5b   :  { %3493 = vrsqrt.f32 %v2590_v39 }
0x1c65   :  { %v3494_v40 = vpop.eup %3493 }
0x1c66   :  { %v2592_v42 = vmul.f32 %v3494_v40, %v2584_v20  ;;  %v2719_v20 = vld [vmem:[%s4439_s21 + $0x60] sm:$0xff]  ;;  %s3552_s21 = smov [#allocation3]  }
0x1c67   :  { %v3420_v53 = vpack.c.bf16 %v2720_v21, %v2719_v20  ;;  %s2828_s5 = sshll.u32 %s3552_s21, 4  ;;  %s2829_s5 = int_to_ptr.vmem [resolvable:$true] %s2828_s5 }
0x1c68   :  { %v2599_v43 = vmul.f32 %v2959_v41, %v2592_v42  ;;  %s3495_s10 = scalar_lea.vmem %s2829_s5, 32  ;;  %p3500_p1 = scmp.lt.s32.totalorder %s2829_s5, %s2829_s5 }
0x1c69   :  { %p3496_p0 = scmp.ne.s32.totalorder %s2829_s5, %s3495_s10  ;;  %p3501_p2 = scmp.lt.s32.totalorder %s3495_s10, %s3495_s10 }
0x1c6a   :  { %v2606_v44 = vadd.f32 %v2960_v22, %v2599_v43 }
0x1c6b   :  { %p3502_p3 = por %p3501_p2, %p3500_p1 }
0x1c6c   :  { %2607 = vst.msk [vmem:[#allocation3] sm:$0x1] %vm191_vm1, %v2606_v44 }
0x1c6d   :  { %2609 = vst.msk [vmem:[#allocation3 - $0x4] sm:$0x20] %vm2608_vm14, %v2606_v44  ;;  %p3503_p4 = pnand %p3502_p3, %p3496_p0 }
0x1c74   :  { %v2610_v57 = vld [vmem:[#allocation3] sm:$0x3] }
0x1c75   :  { %2961 = vmatmul.mubr.msk.f32.vlgmr.msra.gmra.mrb[28].mxu1 %vm207_vm4, %v2610_v57 }
0x1c76   :  { %3397 = vmatpush3.bf16.msra.mxu1 %v3396_v49 }
0x1c77   :  { %3399 = vmatprep.subr.bf16.mxu1 %v3398_v51 }
0x1c7a   :  { %3401 = vmatpush3.bf16.msra.mxu1 %v3400_v60 }
0x1c7b   :  { %3403 = vmatprep.subr.bf16.mxu1 %v3402_v61 }
0x1c7e   :  { %3405 = vmatpush3.bf16.msra.mxu1 %v3404_v0 }
0x1c7f   :  { %3407 = vmatprep.subr.bf16.mxu1 %v3406_v1 }
0x1c82   :  { %3409 = vmatpush3.bf16.msra.mxu1 %v3408_v8 }
0x1c83   :  { %3411 = vmatprep.subr.bf16.mxu1 %v3410_v9 }
0x1c86   :  { %3413 = vmatpush3.bf16.msra.mxu1 %v3412_v3 }
0x1c87   :  { %3415 = vmatprep.subr.bf16.mxu1 %v3414_v13 }
0x1c8a   :  { %3417 = vmatpush3.bf16.msra.mxu1 %v3416_v18 }
0x1c8b   :  { %3419 = vmatprep.subr.bf16.mxu1 %v3418_v19 }
0x1c8e   :  { %3421 = vmatpush3.bf16.msra.mxu1 %v3420_v53 }
0x1c8f   :  { %3423 = vmatprep.subr.bf16.mxu1 %v3422_v24 }
0x1c92   :  { %3425 = vmatpush3.bf16.msra.mxu1 %v3424_v27 }
0x1d48   :  { %v2700_v35 = vpop.f32.mrb[28].mxu1 }
0x1d49   :  { %v2701_v36 = vadd.f32 %v2700_v35, %v2624_v33  ;;  %v2702_v37 = vpop.f32.mrb[29].mxu1 }
0x1d4a   :  { %v2703_v38 = vadd.f32 %v2702_v37, %v2628_v34 }
0x1d4b   :  { %v2705_v40 = vmax.f32 %v2701_v36, 0.0 }
0x1d4c   :  { %v2706_v39 = vmax.f32 %v2703_v38, 0.0 }
0x1d4e   :  { %2810 = vmatprep.mubr.f32.mxu1 %v2706_v39 }
0x1d4f   :  { %2811 = vmatmul.mubr.f32.vlgmr.msra.gmra.mrb[30].mxu1 %v2705_v40 }
0x1d50   :  { %3506 = shalt.err (!%p3503_p4)
}
0x1d51   :  { %s3507_s0 = scalar_lea.hbm %s4443_s25, 32 }
0x1d52   :  { %p3508_p5 = scmp.ne.s32.totalorder %s4443_s25, %s3507_s0  ;;  %p3511_p6 = scmp.lt.u32.totalorder %s3507_s0, %s4443_s25 }
0x1d54   :  { %p3513_p7 = pnand %p3511_p6, %p3508_p5 }
0x1d56   :  { %3516 = shalt.err (!%p3513_p7)
}
0x1d57   :  { %2831 = dma.vmem_to_hbm [thread:$0]  %s2829_s5, 32, %s4443_s25, [#allocation4]   ;;  %v2962_v42 = vld [vmem:[%s4440_s22] ss:$0 sm:$0xff]  ;;  %vm2816_vm15 = vcmask 9216  }
0x1d58   :  { %s3553_s19 = smov [#allocation5]  }
0x1d59   :  { %s2838_s13 = sshll.u32 %s3553_s19, 4  ;;  %s2839_s13 = int_to_ptr.vmem [resolvable:$true] %s2838_s13 }
0x1d5a   :  { %s3517_s7 = scalar_lea.vmem %s2839_s13, 32  ;;  %p3522_p9 = scmp.lt.s32.totalorder %s2839_s13, %s2839_s13 }
0x1d5b   :  { %p3518_p8 = scmp.ne.s32.totalorder %s2839_s13, %s3517_s7  ;;  %p3523_p10 = scmp.lt.s32.totalorder %s3517_s7, %s3517_s7 }
0x1d5d   :  { %p3524_p11 = por %p3523_p10, %p3522_p9 }
0x1d5f   :  { %p3525_p12 = pnand %p3524_p11, %p3518_p8 }
0x1e22   :  { %v3083_v41 = vpop.f32.mrb[30].mxu1 }
0x1e23   :  { %v3084_v22 = vpop.f32.mrb[31].mxu1 }
0x1e24   :  { %v3085_v43 = vadd.f32 %v3084_v22, %v3083_v41 }
0x1e26   :  { %v2813_v44 = vadd.f32 %v3085_v43, %v2962_v42 }
0x1e28   :  { %2817 = vst.msk [vmem:[#allocation5] sm:$0x3] %vm2816_vm15, %v2813_v44 }
0x1e29   :  { %3528 = shalt.err (!%p3525_p12)
}
0x1e2a   :  { %s3529_s16 = scalar_lea.hbm %s4444_s26, 32 }
0x1e2b   :  { %p3530_p13 = scmp.ne.s32.totalorder %s4444_s26, %s3529_s16  ;;  %p3533_p0 = scmp.lt.u32.totalorder %s3529_s16, %s4444_s26 }
0x1e2d   :  { %p3535_p1 = pnand %p3533_p0, %p3530_p13 }
0x1e2f   :  { %3538 = shalt.err (!%p3535_p1)
}
0x1e30   :  { %2841 = dma.vmem_to_hbm [thread:$0]  %s2839_s13, 32, %s4444_s26, [#allocation6]  }
0x1e31   :  { %3539 = dma.done.wait [#allocation4], 32  }
0x1e32   :  { %3540 = vsyncadd [#allocation4], 4294967264 }
0x1e33   :  { %3541 = dma.done.wait [#allocation6], 32  }
0x1e34   :  { %3542 = vsyncadd [#allocation6], 4294967264 }
0x1e35   :  { %2852 = vsyncpa [#allocation4], 1 }
0x1e36   :  { %2853 = vsyncpa [#allocation6], 1 }

</bundles_post_ra>
